<compile_context>
chip_gen: v7x
topology: tpu7x:2x2x1
jax: 0.10.0
libtpu: 0.0.40
codegen_flags: <defaults>
</compile_context>

<pallas_src>
import jax
import jax.numpy as jnp
from jax.experimental import pallas as pl
from jax.experimental.pallas import tpu as pltpu

IN_CH = 2                       # two latents on the channel axis
HIDDEN = 512                    # Conv1d(2, 512, 1)
OUT_CH = 3                      # Conv1d(512, 3, 1)
W1COLS = 1 + IN_CH              # packed first-layer columns: [b1 | W1] = 3


def _recomb_kernel(op_ref, b2_ref, xa_ref, xb_ref, w1_ref, w2_ref, out_ref):
    """One (branch, batch, L-tile) grid step.

    op_ref : SMEM (3, B)        op vector, batch on the long (last) axis
    b2_ref : SMEM (2*3,)        second-conv bias, flattened [mean | std]
    xa_ref : VMEM (1, TILE_L)   channel 0 (latent of one_hot1), positions on lanes
    xb_ref : VMEM (1, TILE_L)   channel 1 (latent of one_hot2)
    w1_ref : VMEM (512, 3)      packed [b1 | W1], hidden on sublanes
    w2_ref : VMEM (3, 512)      W2, hidden on lanes
    out_ref: VMEM (1, TILE_L)   lane-dense output row
    """
    br = pl.program_id(0)
    b = pl.program_id(1)

    # --- Conv1d(2,512,1) + ReLU: two lane-broadcast FMAs on the VPU ---------
    # The activation feeds the MXU matmul below directly, so it round-trips
    # VMEM at most once (operand staging), never as separate mul/reduce passes.
    h = (w1_ref[:, 1:2] * xa_ref[...]
         + w1_ref[:, 2:3] * xb_ref[...]
         + w1_ref[:, 0:1])
    h = jnp.maximum(h, 0)                                    # (HIDDEN, TILE_L)

    # --- fold op_vec into an effective second-layer row (hidden on lanes) ---
    op0 = op_ref[0, b]
    op1 = op_ref[1, b]
    op2 = op_ref[2, b]
    w2_eff = (op0 * w2_ref[0:1, :]
              + op1 * w2_ref[1:2, :]
              + op2 * w2_ref[2:3, :])                        # (1, HIDDEN) f32
    b2_eff = (op0 * b2_ref[br * OUT_CH + 0]
              + op1 * b2_ref[br * OUT_CH + 1]
              + op2 * b2_ref[br * OUT_CH + 2])               # scalar f32

    # --- Conv1d(512,3,1) . op . sum  ==  MXU matmul ---------------------------
    # lhs row is broadcast to the native 8-sublane tile (no M-masking); f32 acc.
    lhs = jnp.broadcast_to(w2_eff.astype(h.dtype), (8, HIDDEN))
    y = jnp.dot(lhs, h, preferred_element_type=jnp.float32)  # (8, TILE_L)
    out_ref[...] = y[0:1, :] + b2_eff


def _choose_tile(L, max_tile=2048):
    """Lane-dense tile along the latent axis with minimal tail padding.

    tile = 128 * ceil(ceil(L/128) / cdiv(L, max_tile)) so the tiles exactly
    cover lp with at most ~one vreg-row of slack per tile (no extra dead tile).
    """
    max_tile = max(128, (max_tile // 128) * 128)
    lanes = pl.cdiv(L, 128)
    n_tiles = pl.cdiv(L, max_tile)
    tile = 128 * pl.cdiv(lanes, n_tiles)
    lp = tile * pl.cdiv(L, tile)
    return tile, lp


def _recomb_pallas(op, b2flat, xa, xb, w1pack, w2pack, tile_l):
    n_br, batch, _, lp = xa.shape
    n_tiles = lp // tile_l

    # advisory cost for XLA scheduling
    flops = n_br * batch * lp * HIDDEN * 6
    bytes_accessed = 4 * (xa.size + xb.size + w1pack.size + w2pack.size
                          + op.size + b2flat.size + n_br * batch * lp)

    return pl.pallas_call(
        _recomb_kernel,
        out_shape=jax.ShapeDtypeStruct((n_br, batch, 1, lp), jnp.float32),
        grid_spec=pltpu.PrefetchScalarGridSpec(
            num_scalar_prefetch=0,
            grid=(n_br, batch, n_tiles),
            in_specs=[
                # scalar tables in SMEM (scale-safe layouts: long axis last / 1D)
                pl.BlockSpec(memory_space=pltpu.MemorySpace.SMEM),   # op     (3, B)
                pl.BlockSpec(memory_space=pltpu.MemorySpace.SMEM),   # b2flat (6,)
                # inputs: (branch, batch, 1, position) — positions on lanes
                pl.BlockSpec((None, None, 1, tile_l),
                             lambda br, b, t: (br, b, 0, t)),        # xa
                pl.BlockSpec((None, None, 1, tile_l),
                             lambda br, b, t: (br, b, 0, t)),        # xb
                # packed weights per branch
                pl.BlockSpec((None, HIDDEN, W1COLS),
                             lambda br, b, t: (br, 0, 0)),           # [b1 | W1] (512,3)
                pl.BlockSpec((None, OUT_CH, HIDDEN),
                             lambda br, b, t: (br, 0, 0)),           # W2 (3,512)
            ],
            out_specs=pl.BlockSpec((None, None, 1, tile_l),
                                   lambda br, b, t: (br, b, 0, t)),
        ),
        compiler_params=pltpu.CompilerParams(
            dimension_semantics=("parallel", "parallel", "parallel"),
            vmem_limit_bytes=32 * 1024 * 1024,
        ),
        cost_estimate=pl.CostEstimate(flops=flops, transcendentals=0,
                                      bytes_accessed=bytes_accessed),
    )(op, b2flat, xa, xb, w1pack, w2pack)


def init_params(key, vocab, latent):
    ks = jax.random.split(key, 12)
    scale = 0.05
    return {
        # stand-in linear encoder for scan.encode_to_latent
        "enc_wm": scale * jax.random.normal(ks[0], (vocab, latent), jnp.float32),
        "enc_bm": scale * jax.random.normal(ks[1], (latent,), jnp.float32),
        "enc_ws": scale * jax.random.normal(ks[2], (vocab, latent), jnp.float32),
        "enc_bs": scale * jax.random.normal(ks[3], (latent,), jnp.float32),
        # mean branch (torch Conv1d weight layouts: (out, in))
        "mw1": scale * jax.random.normal(ks[4], (HIDDEN, IN_CH), jnp.float32),
        "mb1": scale * jax.random.normal(ks[5], (HIDDEN,), jnp.float32),
        "mw2": scale * jax.random.normal(ks[6], (OUT_CH, HIDDEN), jnp.float32),
        "mb2": scale * jax.random.normal(ks[7], (OUT_CH,), jnp.float32),
        # std branch
        "sw1": scale * jax.random.normal(ks[8], (HIDDEN, IN_CH), jnp.float32),
        "sb1": scale * jax.random.normal(ks[9], (HIDDEN,), jnp.float32),
        "sw2": scale * jax.random.normal(ks[10], (OUT_CH, HIDDEN), jnp.float32),
        "sb2": scale * jax.random.normal(ks[11], (OUT_CH,), jnp.float32),
    }


def scan_recomb_forward(params, one_hot1, one_hot2, op_vec, *,
                        max_tile_l=2048, use_bf16_frontend=False):
    # TODO(synk): scan.encode_to_latent is an external submodule; stood-in here
    # with a deterministic linear encoder whose weights live in `params`.
    enc_w = jnp.stack([params["enc_wm"], params["enc_ws"]], axis=0)   # (2, V, L)
    enc_b = jnp.stack([params["enc_bm"], params["enc_bs"]], axis=0)   # (2, L)

    def encode_stacked(one_hot):
        # Emits (branch=2, batch, L) directly in kernel layout, so the wrapper
        # never re-stacks encoder outputs along a channel axis (no extra HBM copy).
        return jnp.einsum("bv,cvl->cbl", one_hot, enc_w) + enc_b[:, None, :]

    xa = encode_stacked(one_hot1)          # channel 0 for both branches
    xb = encode_stacked(one_hot2)          # channel 1 for both branches
    n_br, B, L = xa.shape
    tile_l, lp = _choose_tile(L, max_tile_l)

    cdt = jnp.bfloat16 if use_bf16_frontend else jnp.float32  # keep f32 on v5e
    if lp != L:
        pad = ((0, 0), (0, 0), (0, lp - L))
        xa = jnp.pad(xa, pad)
        xb = jnp.pad(xb, pad)
    xa = xa.reshape(n_br, B, 1, lp).astype(cdt)
    xb = xb.reshape(n_br, B, 1, lp).astype(cdt)

    def pack_w1(w1, b1):
        # columns: [b1 | W1 (512,2)] -> (512, 3), hidden on sublanes
        return jnp.concatenate([b1[:, None], w1], axis=1)

    w1pack = jnp.stack([pack_w1(params["mw1"], params["mb1"]),
                        pack_w1(params["sw1"], params["sb1"])],
                       axis=0).astype(cdt)                          # (2, 512, 3)
    w2pack = jnp.stack([params["mw2"], params["sw2"]],
                       axis=0).astype(jnp.float32)                  # (2, 3, 512)
    b2flat = jnp.concatenate([params["mb2"], params["sb2"]],
                             axis=0).astype(jnp.float32)            # (6,)
    op = op_vec[:, :, 0].T.astype(jnp.float32)                      # (3, B)

    out = _recomb_pallas(op, b2flat, xa, xb, w1pack, w2pack, tile_l)  # (2,B,1,lp)
    out = out[:, :, 0, :L]
    return out[0], out[1]


def _reference_forward(params, one_hot1, one_hot2, op_vec):
    """Pure-JAX reference following the PyTorch graph (NCL convs)."""
    def encode(x):
        return (x @ params["enc_wm"] + params["enc_bm"],
                x @ params["enc_ws"] + params["enc_bs"])

    def branch(x_ncl, w1, b1, w2, b2):
        h = jnp.einsum("bcl,hc->bhl", x_ncl, w1) + b1[None, :, None]
        h = jnp.maximum(h, 0.0)
        y = jnp.einsum("bhl,oh->bol", h, w2) + b2[None, :, None]
        return jnp.sum(y * op_vec, axis=1)

    m1, s1 = encode(one_hot1)
    m2, s2 = encode(one_hot2)
    means = jnp.stack([m1, m2], axis=1)
    stds = jnp.stack([s1, s2], axis=1)
    return (branch(means, params["mw1"], params["mb1"], params["mw2"], params["mb2"]),
            branch(stds, params["sw1"], params["sb1"], params["sw2"], params["sb2"]))


if __name__ == "__main__":
    B, V, L = 2, 8, 16  # batch, one-hot vocab, latent dim
    key = jax.random.PRNGKey(0)
    k_param, k_idx1, k_idx2, k_op = jax.random.split(key, 4)

    params = init_params(k_param, V, L)

    idx1 = jax.random.randint(k_idx1, (B,), 0, V)
    idx2 = jax.random.randint(k_idx2, (B,), 0, V)
    one_hot1 = jax.nn.one_hot(idx1, V, dtype=jnp.float32)                   # (B, V)
    one_hot2 = jax.nn.one_hot(idx2, V, dtype=jnp.float32)                   # (B, V)
    op_idx = jax.random.randint(k_op, (B,), 0, OUT_CH)
    op_vec = jax.nn.one_hot(op_idx, OUT_CH, dtype=jnp.float32)[:, :, None]  # (B, 3, 1)

    mean_out, std_out = scan_recomb_forward(params, one_hot1, one_hot2, op_vec)
    jax.block_until_ready((mean_out, std_out))

    ref_mean, ref_std = _reference_forward(params, one_hot1, one_hot2, op_vec)
    assert mean_out.shape == (B, L) and std_out.shape == (B, L)
    # Front-end FMAs and the op fold are exact f32; the only reduced-precision
    # candidate is the in-kernel f32 MXU matmul (may run as bf16 passes on some
    # TPU generations), so the tolerance allows for that while still catching
    # any real layout/weight/fold bug (which would be O(1e-2..1) off).
    assert jnp.allclose(mean_out, ref_mean, atol=2e-3, rtol=2e-3), \
        float(jnp.max(jnp.abs(mean_out - ref_mean)))
    assert jnp.allclose(std_out, ref_std, atol=2e-3, rtol=2e-3), \
        float(jnp.max(jnp.abs(std_out - ref_std)))

    print("KERNEL_OK")
</pallas_src>

<mosaic_0001>
module attributes {stable_mosaic.version = 11 : i64} {
  func.func @_recomb_kernel(%arg0: i32, %arg1: i32, %arg2: i32, %arg3: memref<3x2xf32, #tpu.memory_space<smem>>, %arg4: memref<6xf32, #tpu.memory_space<smem>>, %arg5: memref<1x1x1x128xf32, #tpu.memory_space<vmem>>, %arg6: memref<1x1x1x128xf32, #tpu.memory_space<vmem>>, %arg7: memref<1x512x3xf32, #tpu.memory_space<vmem>>, %arg8: memref<1x3x512xf32, #tpu.memory_space<vmem>>, %arg9: memref<1x1x1x128xf32, #tpu.memory_space<vmem>>) attributes {dimension_semantics = [#tpu.dimension_semantics<parallel>, #tpu.dimension_semantics<parallel>, #tpu.dimension_semantics<parallel>], iteration_bounds = array<i64: 2, 2, 1>, scalar_prefetch = 0 : i64, scratch_operands = 0 : i64, tpu.core_type = #tpu.core_type<tc>, window_params = [{transform_indices = @transform_0, window_bounds = array<i64: 3, 2>}, {transform_indices = @transform_1, window_bounds = array<i64: 6>}, {transform_indices = @transform_2, window_bounds = array<i64: 1, 1, 1, 128>}, {transform_indices = @transform_3, window_bounds = array<i64: 1, 1, 1, 128>}, {transform_indices = @transform_4, window_bounds = array<i64: 1, 512, 3>}, {transform_indices = @transform_5, window_bounds = array<i64: 1, 3, 512>}, {transform_indices = @transform_6, window_bounds = array<i64: 1, 1, 1, 128>}]} {
    %c0 = arith.constant 0 : index
    %c0_0 = arith.constant 0 : index
    %c1 = arith.constant 1 : index
    %0 = vector.load %arg7[%c0, %c0_0, %c1] : memref<1x512x3xf32, #tpu.memory_space<vmem>>, vector<1x512x1xf32>
    %1 = vector.shape_cast %0 : vector<1x512x1xf32> to vector<512x1xf32>
    %c0_1 = arith.constant 0 : index
    %c0_2 = arith.constant 0 : index
    %c0_3 = arith.constant 0 : index
    %c0_4 = arith.constant 0 : index
    %2 = vector.load %arg5[%c0_1, %c0_2, %c0_3, %c0_4] : memref<1x1x1x128xf32, #tpu.memory_space<vmem>>, vector<1x1x1x128xf32>
    %3 = vector.shape_cast %2 : vector<1x1x1x128xf32> to vector<1x128xf32>
    %4 = vector.broadcast %1 : vector<512x1xf32> to vector<512x128xf32>
    %5 = vector.broadcast %3 : vector<1x128xf32> to vector<512x128xf32>
    %6 = arith.mulf %4, %5 : vector<512x128xf32>
    %c0_5 = arith.constant 0 : index
    %c0_6 = arith.constant 0 : index
    %c2 = arith.constant 2 : index
    %7 = vector.load %arg7[%c0_5, %c0_6, %c2] : memref<1x512x3xf32, #tpu.memory_space<vmem>>, vector<1x512x1xf32>
    %8 = vector.shape_cast %7 : vector<1x512x1xf32> to vector<512x1xf32>
    %c0_7 = arith.constant 0 : index
    %c0_8 = arith.constant 0 : index
    %c0_9 = arith.constant 0 : index
    %c0_10 = arith.constant 0 : index
    %9 = vector.load %arg6[%c0_7, %c0_8, %c0_9, %c0_10] : memref<1x1x1x128xf32, #tpu.memory_space<vmem>>, vector<1x1x1x128xf32>
    %10 = vector.shape_cast %9 : vector<1x1x1x128xf32> to vector<1x128xf32>
    %11 = vector.broadcast %8 : vector<512x1xf32> to vector<512x128xf32>
    %12 = vector.broadcast %10 : vector<1x128xf32> to vector<512x128xf32>
    %13 = arith.mulf %11, %12 : vector<512x128xf32>
    %14 = arith.addf %6, %13 : vector<512x128xf32>
    %c0_11 = arith.constant 0 : index
    %c0_12 = arith.constant 0 : index
    %c0_13 = arith.constant 0 : index
    %15 = vector.load %arg7[%c0_11, %c0_12, %c0_13] : memref<1x512x3xf32, #tpu.memory_space<vmem>>, vector<1x512x1xf32>
    %16 = vector.shape_cast %15 : vector<1x512x1xf32> to vector<512x1xf32>
    %17 = vector.broadcast %16 : vector<512x1xf32> to vector<512x128xf32>
    %18 = arith.addf %14, %17 : vector<512x128xf32>
    %cst = arith.constant 0.000000e+00 : f32
    %19 = vector.broadcast %cst : f32 to vector<512x128xf32>
    %20 = arith.maximumf %18, %19 : vector<512x128xf32>
    %c0_14 = arith.constant 0 : index
    %21 = arith.index_cast %arg1 : i32 to index
    %22 = memref.load %arg3[%c0_14, %21] : memref<3x2xf32, #tpu.memory_space<smem>>
    %c1_15 = arith.constant 1 : index
    %23 = arith.index_cast %arg1 : i32 to index
    %24 = memref.load %arg3[%c1_15, %23] : memref<3x2xf32, #tpu.memory_space<smem>>
    %c2_16 = arith.constant 2 : index
    %25 = arith.index_cast %arg1 : i32 to index
    %26 = memref.load %arg3[%c2_16, %25] : memref<3x2xf32, #tpu.memory_space<smem>>
    %c0_17 = arith.constant 0 : index
    %c0_18 = arith.constant 0 : index
    %c0_19 = arith.constant 0 : index
    %27 = vector.load %arg8[%c0_17, %c0_18, %c0_19] : memref<1x3x512xf32, #tpu.memory_space<vmem>>, vector<1x1x512xf32>
    %28 = vector.shape_cast %27 : vector<1x1x512xf32> to vector<1x512xf32>
    %29 = vector.broadcast %22 : f32 to vector<1x512xf32>
    %30 = arith.mulf %29, %28 : vector<1x512xf32>
    %c0_20 = arith.constant 0 : index
    %c1_21 = arith.constant 1 : index
    %c0_22 = arith.constant 0 : index
    %31 = vector.load %arg8[%c0_20, %c1_21, %c0_22] : memref<1x3x512xf32, #tpu.memory_space<vmem>>, vector<1x1x512xf32>
    %32 = vector.shape_cast %31 : vector<1x1x512xf32> to vector<1x512xf32>
    %33 = vector.broadcast %24 : f32 to vector<1x512xf32>
    %34 = arith.mulf %33, %32 : vector<1x512xf32>
    %35 = arith.addf %30, %34 : vector<1x512xf32>
    %c0_23 = arith.constant 0 : index
    %c2_24 = arith.constant 2 : index
    %c0_25 = arith.constant 0 : index
    %36 = vector.load %arg8[%c0_23, %c2_24, %c0_25] : memref<1x3x512xf32, #tpu.memory_space<vmem>>, vector<1x1x512xf32>
    %37 = vector.shape_cast %36 : vector<1x1x512xf32> to vector<1x512xf32>
    %38 = vector.broadcast %26 : f32 to vector<1x512xf32>
    %39 = arith.mulf %38, %37 : vector<1x512xf32>
    %40 = arith.addf %35, %39 : vector<1x512xf32>
    %c3_i32 = arith.constant 3 : i32
    %41 = arith.muli %arg0, %c3_i32 : i32
    %c0_i32 = arith.constant 0 : i32
    %42 = arith.addi %41, %c0_i32 : i32
    %43 = arith.index_cast %42 : i32 to index
    %44 = memref.load %arg4[%43] : memref<6xf32, #tpu.memory_space<smem>>
    %45 = arith.mulf %22, %44 : f32
    %c3_i32_26 = arith.constant 3 : i32
    %46 = arith.muli %arg0, %c3_i32_26 : i32
    %c1_i32 = arith.constant 1 : i32
    %47 = arith.addi %46, %c1_i32 : i32
    %48 = arith.index_cast %47 : i32 to index
    %49 = memref.load %arg4[%48] : memref<6xf32, #tpu.memory_space<smem>>
    %50 = arith.mulf %24, %49 : f32
    %51 = arith.addf %45, %50 : f32
    %c3_i32_27 = arith.constant 3 : i32
    %52 = arith.muli %arg0, %c3_i32_27 : i32
    %c2_i32 = arith.constant 2 : i32
    %53 = arith.addi %52, %c2_i32 : i32
    %54 = arith.index_cast %53 : i32 to index
    %55 = memref.load %arg4[%54] : memref<6xf32, #tpu.memory_space<smem>>
    %56 = arith.mulf %26, %55 : f32
    %57 = arith.addf %51, %56 : f32
    %58 = vector.shape_cast %40 : vector<1x512xf32> to vector<1x512xf32>
    %59 = vector.broadcast %58 : vector<1x512xf32> to vector<8x512xf32>
    %cst_28 = arith.constant dense<0.000000e+00> : vector<8x128xf32>
    %60 = tpu.matmul %59, %20, %cst_28 {dimension_numbers = #tpu.dot_dimension_numbers<[1], [0], [0], [1], [0, 0, 1, 1], [], []>} : vector<8x512xf32>, vector<512x128xf32>, vector<8x128xf32> -> vector<8x128xf32>
    %61 = vector.extract_strided_slice %60 {offsets = [0, 0], sizes = [1, 128], strides = [1, 1]} : vector<8x128xf32> to vector<1x128xf32>
    %62 = vector.broadcast %57 : f32 to vector<1x128xf32>
    %63 = arith.addf %61, %62 : vector<1x128xf32>
    %c0_29 = arith.constant 0 : index
    %c0_30 = arith.constant 0 : index
    %c0_31 = arith.constant 0 : index
    %c0_32 = arith.constant 0 : index
    %64 = vector.load %arg9[%c0_29, %c0_30, %c0_31, %c0_32] : memref<1x1x1x128xf32, #tpu.memory_space<vmem>>, vector<1x1x1x128xf32>
    %65 = vector.shape_cast %64 : vector<1x1x1x128xf32> to vector<1x128xf32>
    %66 = vector.shape_cast %63 : vector<1x128xf32> to vector<1x1x1x128xf32>
    tpu.vector_store %arg9[%c0_29, %c0_30, %c0_31, %c0_32], %66 {strides = array<i32>} : memref<1x1x1x128xf32, #tpu.memory_space<vmem>>, vector<1x1x1x128xf32>,
    return
  }
  func.func @transform_0(%arg0: i32, %arg1: i32, %arg2: i32) -> (i32, i32) {
    %c0_i32 = arith.constant 0 : i32
    %c0_i32_0 = arith.constant 0 : i32
    %c0_i32_1 = arith.constant 0 : i32
    return %c0_i32, %c0_i32_0 : i32, i32
  }
  func.func @transform_1(%arg0: i32, %arg1: i32, %arg2: i32) -> i32 {
    %c0_i32 = arith.constant 0 : i32
    %c0_i32_0 = arith.constant 0 : i32
    return %c0_i32 : i32
  }
  func.func @transform_2(%arg0: i32, %arg1: i32, %arg2: i32) -> (i32, i32, i32, i32) {
    %c0_i32 = arith.constant 0 : i32
    %c0_i32_0 = arith.constant 0 : i32
    return %arg0, %arg1, %c0_i32, %arg2 : i32, i32, i32, i32
  }
  func.func @transform_3(%arg0: i32, %arg1: i32, %arg2: i32) -> (i32, i32, i32, i32) {
    %c0_i32 = arith.constant 0 : i32
    %c0_i32_0 = arith.constant 0 : i32
    return %arg0, %arg1, %c0_i32, %arg2 : i32, i32, i32, i32
  }
  func.func @transform_4(%arg0: i32, %arg1: i32, %arg2: i32) -> (i32, i32, i32) {
    %c0_i32 = arith.constant 0 : i32
    %c0_i32_0 = arith.constant 0 : i32
    %c0_i32_1 = arith.constant 0 : i32
    return %arg0, %c0_i32, %c0_i32_0 : i32, i32, i32
  }
  func.func @transform_5(%arg0: i32, %arg1: i32, %arg2: i32) -> (i32, i32, i32) {
    %c0_i32 = arith.constant 0 : i32
    %c0_i32_0 = arith.constant 0 : i32
    %c0_i32_1 = arith.constant 0 : i32
    return %arg0, %c0_i32, %c0_i32_0 : i32, i32, i32
  }
  func.func @transform_6(%arg0: i32, %arg1: i32, %arg2: i32) -> (i32, i32, i32, i32) {
    %c0_i32 = arith.constant 0 : i32
    %c0_i32_0 = arith.constant 0 : i32
    return %arg0, %arg1, %c0_i32, %arg2 : i32, i32, i32, i32
  }
}

</mosaic_0001>

<bundles_post_ra>
// kernel: tpu_custom_call.1
= control target key start
LH: loop header
LB: loop body
LE: loop exit
PB: predicated region body
PF: predicated region fallthrough
CT: control target
= control target key end

     0   :  { %s3561_s0 = inlined_call_operand.vmem [shape: f32[3,2], index: 0, kind: input, shape index: {}]   ;;  %s3562_s1 = inlined_call_operand.vmem [shape: f32[6], index: 1, kind: input, shape index: {}]   ;;  %s3563_s2 = inlined_call_operand.vmem [shape: f32[2,2,1,128], index: 2, kind: input, shape index: {}]   ;;  %s3564_s3 = inlined_call_operand.vmem [shape: f32[2,2,1,128], index: 3, kind: input, shape index: {}]   ;;  %s3565_s4 = inlined_call_operand.vmem [shape: f32[2,512,3], index: 4, kind: input, shape index: {}]   ;;  %s3566_s5 = inlined_call_operand.vmem [shape: f32[2,3,512], index: 5, kind: input, shape index: {}]   ;;  %s3567_s6 = inlined_call_operand.hbm [shape: f32[2,2,1,128], index: 6, kind: output, shape index: {}]  }
   0x1   :  { %3593 = sst [smem:[#allocation98_spill]] %s3561_s0 }
   0x2   :  { %3594 = sst [smem:[#allocation99_spill]] %s3562_s1 }
   0x3   :  { %3595 = sst [smem:[#allocation100_spill]] %s3563_s2 }
   0x4   :  { %3596 = sst [smem:[#allocation101_spill]] %s3564_s3 }
   0x5   :  { %3597 = sst [smem:[#allocation102_spill]] %s3565_s4 }
   0x6   :  { %3598 = sst [smem:[#allocation103_spill]] %s3566_s5 }
   0x7   :  { %11 = vsyncpa [#allocation4], 0 }
   0x8   :  { %12 = vsyncpa [#allocation6], 0 }
   0x9   :  { %13 = vsyncpa [#allocation3], 0 }
   0xa   :  { %15 = vsyncpa [#allocation3 + $0x1], 0  ;;  %s2442_s21 = smov 0   ;;  %s2444_s22 = smov 0  }
   0xb   :  { %s2446_s23 = smov 0   ;;  %s2448_s24 = smov 0  }
   0xc   :  { %s2450_s25 = smov 0   ;;  %s2452_s26 = smov 0  }
   0xd   :  { %s2454_s27 = smov 0   ;;  %s2456_s28 = smov 0  }
   0xe LB: > { %s1986_s29 = sadd.s32 4294967295, %s2399_s28   ;;  %s1987_s30 = sadd.s32 4294967294, %s2399_s28   ;;  %s2399_s28 = sphi %s2456_s28, %s21_s28   ;;  %s2395_s27 = sphi %s2454_s27, %s3806_s27   ;;  %s2391_s26 = sphi %s2452_s26, %s3805_s26   ;;  %s2387_s25 = sphi %s2450_s25, %s3804_s25   ;;  %s2383_s24 = sphi %s2448_s24, %s3803_s24   ;;  %s2379_s23 = sphi %s2446_s23, %s3802_s23   ;;  %s2375_s22 = sphi %s2444_s22, %s3801_s22   ;;  %s2371_s21 = sphi %s2442_s21, %s3800_s21  }
   0xf   : > { %s36_s7 = sadd.s32 1, %s2391_s26  ;;  %s40_s8 = sadd.s32 1, %s2395_s27 }
  0x10   : > { %p38_p0 = scmp.ge.s32.totalorder %s36_s7, 2  ;;  %s205_s9 = sadd.s32 1, %s2379_s23 }
  0x11   : > { %p215_p1 = scmp.ne.s32.totalorder %s2379_s23, %s2375_s22  ;;  %p216_p2 = scmp.eq.s32.totalorder %s1986_s29, 3 }
  0x12   : > { %s3808_s7 = smov (%p38_p0, %s36_s7), 0  ;;  %s3810_s8 = smov (!%p38_p0, %s40_s8), %s2395_s27 }
  0x13   : > { %s199_s10 = ssub.s32 %s2391_s26, %s3808_s7  ;;  %p2494_p3 = por %p216_p2, %p215_p1 }
  0x14   : > { %p42_p4 = scmp.ge.s32.totalorder %s3810_s8, 2  ;;  %p221_p5 = scmp.ne.s32.totalorder %s2375_s22, %s2371_s21 }
  0x15   : > { %s3599_s11 = scalar_select %p2494_p3, 1, 0 }
  0x16   : > { %p222_p6 = scmp.eq.s32.totalorder %s1987_s30, 3  ;;  %p1988_p7 = scmp.ge.s32.totalorder %s2399_s28, 1 }
  0x17   : > { %s3812_s8 = smov (%p42_p4, %s3810_s8), 0  ;;  %p229_p9 = scmp.lt.s32.totalorder %s2399_s28, 5 }
  0x18   : > { %3600 = sst [smem:[#allocation11_spill]] %s3812_s8  ;;  %p2503_p8 = por %p222_p6, %p221_p5 }
  0x19   : > { %s198_s13 = ssub.s32 %s2395_s27, %s3812_s8  ;;  %p2510_p10 = pnand %p1988_p7, %p229_p9 }
  0x1a   : > { %s3601_s12 = scalar_select %p2503_p8, 1, 0 }
  0x1b   : > { %s200_s14 = sor.u32 %s199_s10, %s198_s13  ;;  %p2514_p12 = scmp.eq.s32.totalorder %s1986_s29, 0 }
  0x1c   : > { %s3602_s15 = scalar_select %p2510_p10, 1, 0 }
  0x1d   : > { %p203_p11 = scmp.eq.s32.totalorder %s200_s14, 0  ;;  %p2161_p13 = pneg %p2510_p10 }
  0x1e   : > { %s3603_s16 = scalar_select %p2514_p12, 1, 0 }
  0x1f   : > { %s3604_s0 = sld [smem:[#allocation98_spill]]  ;;  %p2528_p0 = pnand %p2514_p12, %p2161_p13 }
  0x20   : > { %s2524_s20 = scalar_select %p203_p11, %s2379_s23, %s205_s9  }
  0x21   : > { %s3606_s1 = sld [smem:[#allocation99_spill]]  ;;  %p2269_p2 = pneg %p2528_p0 }
  0x25   : > { %s242_s19 = sshll.u32 %s3604_s0, 4  ;;  %s243_s19 = int_to_ptr.vmem [resolvable:$true] %s242_s19 }
  0x26   : > { %s2267_s14 = scalar_lea.vmem %s243_s19, 64  ;;  %p2275_p6 = scmp.lt.s32.totalorder %s243_s19, %s243_s19 }
  0x27   : > { %s253_s13 = sshll.u32 %s3606_s1, 4  ;;  %p2268_p1 = scmp.ne.s32.totalorder %s243_s19, %s2267_s14  ;;  %s254_s13 = int_to_ptr.vmem [resolvable:$true] %s253_s13 }
  0x28   : > { %p2276_p7 = scmp.lt.s32.totalorder %s2267_s14, %s2267_s14 }
  0x29   : > { %p2270_p4 = pnand %p2269_p2, %p2268_p1 }
  0x2a   : > { %p2277_p9 = por %p2276_p7, %p2275_p6 }
  0x2b   : > { %p2271_p5 = pneg %p2270_p4 }
  0x2d   : > { %p2278_p11 = pnand %p2277_p9, %p2271_p5 }
  0x2f   : > { %2281 = shalt.err (!%p2278_p11)
}
  0x30   : > { %s2401_s9 = smov [#allocation2]   ;;  %s2282_s17 = scalar_lea.vmem %s254_s13, 16 }
  0x31   : > { %2164 = dma.vmem_to_smem (!%p2528_p0), %s243_s19, 64, %s2401_s9, [#allocation4]  }
  0x32   : > { %p2283_p13 = scmp.ne.s32.totalorder %s254_s13, %s2282_s17  ;;  %p2290_p12 = scmp.lt.s32.totalorder %s254_s13, %s254_s13 }
  0x33   : > { %p2291_p10 = scmp.lt.s32.totalorder %s2282_s17, %s2282_s17 }
  0x34   : > { %p2285_p8 = pnand %p2283_p13, %p2269_p2 }
  0x35   : > { %p2292_p1 = por %p2291_p10, %p2290_p12 }
  0x36   : > { %p2286_p3 = pneg %p2285_p8 }
  0x38   : > { %p2293_p4 = pnand %p2292_p1, %p2286_p3 }
  0x3a   : > { %2296 = shalt.err (!%p2293_p4)
}
  0x3b   : > { %s2402_s18 = smov [#allocation5]   ;;  %p3607_p5 = scmp.ne.s32.totalorder %s3602_s15, 0 }
  0x3c   : > { %2167 = dma.vmem_to_smem (!%p2528_p0), %s254_s13, 16, %s2402_s18, [#allocation6]  }
  0x3d   : > { %308 = sbr.rel (%p3607_p5) target bundleno = 877 (0x36d), region = 44 }
  0x44   : > { %p3608_p6 = scmp.ne.s32.totalorder %s3603_s16, 0 }
  0x46   : > { %2358 = dma.done.wait (%p3608_p6), [#allocation4], 64  }
  0x47   : > { %2360 = vsyncadd (%p3608_p6), [#allocation4], 4294967232 }
  0x48   : > { %2362 = dma.done.wait (%p3608_p6), [#allocation6], 16  }
  0x49   : > { %2364 = vsyncadd (%p3608_p6), [#allocation6], 4294967280 }
  0x4a   : > { %318 = sfence }
  0x4b   : > { %p367_p3 = scmp.lt.s32.totalorder %s2387_s25, 1  ;;  %v2403_v0 = vmov 1   ;;  %s3609_s4 = sld [smem:[#allocation102_spill]] }
  0x4c   : > { %2247 = vset.pattern.permute.xlu1 %v2403_v0  ;;  %2246 = vset.pattern.permute.xlu0 %v2403_v0  ;;  %p369_p8 = scmp.lt.s32.totalorder %s2383_s24, 1  ;;  %s3706_s3 = sld [smem:[#allocation101_spill]] }
  0x4d   : > { %s2553_s15 = scalar_select %p367_p3, %s2387_s25, 1 }
  0x4e   : > { %s370_s16 = scalar_select %p369_p8, %s2383_s24, 1 }
  0x4f   : > { %s2011_s19 = sshll.u32 %s2553_s15, 9  ;;  %s1995_s13 = sshll.u32 %s2553_s15, 1 }
  0x50   : > { %s375_s14 = sadd.s32 %s1995_s13, %s370_s16  ;;  %s3707_s2 = sld [smem:[#allocation100_spill]] }
  0x51   : > { %s2559_s29 = scalar_lea.vmem %s3609_s4, %s2011_s19  ;;  %s1628_s16 = sshra.s32 %s2383_s24, 7 }
  0x52   : > { %v2562_v1 = vld [vmem:[%s2559_s29 + $0x10] sm:$0xff]  ;;  %v2565_v2 = vld [vmem:[%s2559_s29] sm:$0xff]  ;;  %v2570_v3 = vld [vmem:[%s2559_s29 + $0x18] sm:$0xff]  ;;  %s386_s18 = scalar_lea.vmem %s3706_s3, %s375_s14  ;;  %s2013_s13 = sshll.u32 %s1628_s16, 7 }
  0x53   : > { %474 = vperm.xlu1 %2247, %v2562_v1   ;;  %464 = vperm.xlu0 %2246, %v2565_v2   ;;  %v2573_v4 = vld [vmem:[%s2559_s29 + $0x8] sm:$0xff]  ;;  %v2581_v6 = vld [vmem:[%s2559_s29 + $0x20] sm:$0xff]  ;;  %v2586_v7 = vld [vmem:[%s2559_s29 + $0x38] sm:$0xff]  ;;  %s1633_s9 = sand.u32 127, %s2383_s24  ;;  %s2016_s30 = sadd.s32 256, %s2013_s13 }
  0x54   : > { %v2578_v5 = vld [vmem:[%s2559_s29 + $0x28] sm:$0xff]  ;;  %v2589_v8 = vld [vmem:[%s2559_s29 + $0x30] sm:$0xff]  ;;  %v2597_v10 = vld [vmem:[%s2559_s29 + $0x40] sm:$0xff]  ;;  %s3734_s5 = sld [smem:[#allocation103_spill]]  ;;  %s2007_s3 = sshll.u32 %s2387_s25, 1 }
  0x55   : > { %v2594_v9 = vld [vmem:[%s2559_s29 + $0x48] sm:$0xff]  ;;  %v2602_v11 = vld [vmem:[%s2559_s29 + $0x58] sm:$0xff]  ;;  %v2605_v12 = vld [vmem:[%s2559_s29 + $0x50] sm:$0xff]  ;;  %p3797_p12 = scmp.ne.s32.totalorder %s3599_s11, 0 }
  0x56   : > { %v2610_v13 = vld [vmem:[%s2559_s29 + $0x68] sm:$0xff]  ;;  %v2613_v14 = vld [vmem:[%s2559_s29 + $0x60] sm:$0xff]  ;;  %v2618_v15 = vld [vmem:[%s2559_s29 + $0x78] sm:$0xff]  ;;  %s376_s10 = scalar_lea.vmem %s3707_s2, %s375_s14  ;;  %s2014_s14 = sadd.s32 128, %s2013_s13 }
  0x57   : > { %479 = vperm.xlu1 %2247, %v2570_v3   ;;  %469 = vperm.xlu0 %2246, %v2573_v4   ;;  %3610 = vst [vmem:[#allocation12_spill] sm:$0xff] %v2610_v13  ;;  %v2621_v16 = vld [vmem:[%s2559_s29 + $0x70] sm:$0xff]  ;;  %v2626_v17 = vld [vmem:[%s2559_s29 + $0x88] sm:$0xff]  ;;  %v2629_v18 = vld [vmem:[%s2559_s29 + $0x80] sm:$0xff]  ;;  %s1634_s17 = sadd.s32 %s2014_s14, %s1633_s9  ;;  %s2012_s13 = sshll.u32 %s2553_s15, 4 }
  0x58   : > { %v2634_v19 = vld [vmem:[%s2559_s29 + $0x98] sm:$0xff]  ;;  %v2637_v20 = vld [vmem:[%s2559_s29 + $0x90] sm:$0xff]  ;;  %v2642_v21 = vld [vmem:[%s2559_s29 + $0xa8] sm:$0xff]  ;;  %s3308_s19 = sld [smem:[#allocation2 + %s1634_s17]]  ;;  %s1653_s15 = smul.u32 3, %s2387_s25 }
  0x59   : > { %v2645_v22 = vld [vmem:[%s2559_s29 + $0xa0] sm:$0xff]  ;;  %v2650_v23 = vld [vmem:[%s2559_s29 + $0xb8] sm:$0xff]  ;;  %v2653_v24 = vld [vmem:[%s2559_s29 + $0xb0] sm:$0xff]  ;;  %s365_s2 = sand.u32 1, %s2375_s22  }
  0x5a   : > { %v2658_v25 = vld [vmem:[%s2559_s29 + $0xc8] sm:$0xff]  ;;  %v2661_v26 = vld [vmem:[%s2559_s29 + $0xc0] sm:$0xff]  ;;  %v2666_v27 = vld [vmem:[%s2559_s29 + $0xd8] sm:$0xff]  ;;  %s396_s17 = scalar_lea.vmem %s3734_s5, %s2012_s13  ;;  %s1660_s13 = sadd.s32 2, %s1653_s15 }
  0x5b   : > { %489 = vperm.xlu1 %2247, %v2578_v5   ;;  %484 = vperm.xlu0 %2246, %v2581_v6   ;;  %v2669_v28 = vld [vmem:[%s2559_s29 + $0xd0] sm:$0xff]  ;;  %v2674_v29 = vld [vmem:[%s2559_s29 + $0xe8] sm:$0xff]  ;;  %v2677_v30 = vld [vmem:[%s2559_s29 + $0xe0] sm:$0xff]  ;;  %s1661_s14 = sld [smem:[#allocation5 + %s1660_s13]]  ;;  %s1840_s5 = sadd.s32 %s2383_s24, %s2007_s3 }
  0x5c   : > { %3611 = vst [vmem:[#allocation13_spill] sm:$0xff] %v2674_v29  ;;  %v2682_v31 = vld [vmem:[%s2559_s29 + $0xf8] sm:$0xff]  ;;  %v2685_v32 = vld [vmem:[%s2559_s29 + $0xf0] sm:$0xff]  ;;  %v2690_v33 = vld [vmem:[%s2559_s29 + $0x108] sm:$0xff]  ;;  %s2008_s8 = sshll.u32 %s1840_s5, 4  ;;  %s2406_s3 = smov [#allocation7]  }
  0x5d   : > { %3612 = vst [vmem:[#allocation14_spill] sm:$0xff] %v2682_v31  ;;  %v2693_v34 = vld [vmem:[%s2559_s29 + $0x100] sm:$0xff]  ;;  %v2698_v35 = vld [vmem:[%s2559_s29 + $0x118] sm:$0xff]  ;;  %v2701_v36 = vld [vmem:[%s2559_s29 + $0x110] sm:$0xff] }
  0x5e   : > { %v2706_v37 = vld [vmem:[%s2559_s29 + $0x128] sm:$0xff]  ;;  %v2709_v38 = vld [vmem:[%s2559_s29 + $0x120] sm:$0xff]  ;;  %v2714_v39 = vld [vmem:[%s2559_s29 + $0x138] sm:$0xff] }
  0x5f   : > { %499 = vperm.xlu1 %2247, %v2586_v7   ;;  %494 = vperm.xlu0 %2246, %v2589_v8   ;;  %v2717_v40 = vld [vmem:[%s2559_s29 + $0x130] sm:$0xff]  ;;  %v2722_v41 = vld [vmem:[%s2559_s29 + $0x148] sm:$0xff]  ;;  %v2725_v42 = vld [vmem:[%s2559_s29 + $0x140] sm:$0xff] }
  0x60   : > { %v2730_v43 = vld [vmem:[%s2559_s29 + $0x158] sm:$0xff]  ;;  %v2733_v44 = vld [vmem:[%s2559_s29 + $0x150] sm:$0xff]  ;;  %v2738_v45 = vld [vmem:[%s2559_s29 + $0x168] sm:$0xff] }
  0x61   : > { %3613 = vst [vmem:[#allocation15_spill] sm:$0xff] %v2738_v45  ;;  %v2741_v46 = vld [vmem:[%s2559_s29 + $0x160] sm:$0xff]  ;;  %v2746_v47 = vld [vmem:[%s2559_s29 + $0x178] sm:$0xff]  ;;  %v2749_v48 = vld [vmem:[%s2559_s29 + $0x170] sm:$0xff] }
  0x62   : > { %3614 = vst [vmem:[#allocation16_spill] sm:$0xff] %v2746_v47  ;;  %v2754_v49 = vld [vmem:[%s2559_s29 + $0x188] sm:$0xff]  ;;  %v2757_v50 = vld [vmem:[%s2559_s29 + $0x180] sm:$0xff]  ;;  %v2762_v51 = vld [vmem:[%s2559_s29 + $0x198] sm:$0xff] }
  0x63   : > { %509 = vperm.xlu1 %2247, %v2594_v9   ;;  %504 = vperm.xlu0 %2246, %v2597_v10   ;;  %v2765_v52 = vld [vmem:[%s2559_s29 + $0x190] sm:$0xff]  ;;  %v2770_v53 = vld [vmem:[%s2559_s29 + $0x1a8] sm:$0xff]  ;;  %v2773_v54 = vld [vmem:[%s2559_s29 + $0x1a0] sm:$0xff] }
  0x64   : > { %v2778_v55 = vld [vmem:[%s2559_s29 + $0x1b8] sm:$0xff]  ;;  %v2781_v56 = vld [vmem:[%s2559_s29 + $0x1b0] sm:$0xff]  ;;  %v2786_v57 = vld [vmem:[%s2559_s29 + $0x1c8] sm:$0xff] }
  0x65   : > { %3615 = vst [vmem:[#allocation17_spill] sm:$0xff] %v2781_v56  ;;  %v2789_v58 = vld [vmem:[%s2559_s29 + $0x1c0] sm:$0xff]  ;;  %v2794_v59 = vld [vmem:[%s2559_s29 + $0x1d8] sm:$0xff]  ;;  %v2797_v60 = vld [vmem:[%s2559_s29 + $0x1d0] sm:$0xff] }
  0x66   : > { %3616 = vst [vmem:[#allocation18_spill] sm:$0xff] %v2789_v58  ;;  %3617 = vst [vmem:[#allocation19_spill] sm:$0xff] %v2797_v60  ;;  %v2802_v61 = vld [vmem:[%s2559_s29 + $0x1e8] sm:$0xff]  ;;  %v2805_v62 = vld [vmem:[%s2559_s29 + $0x1e0] sm:$0xff] }
  0x67   : > { %519 = vperm.xlu1 %2247, %v2602_v11   ;;  %514 = vperm.xlu0 %2246, %v2605_v12   ;;  %3618 = vst [vmem:[#allocation20_spill] sm:$0xff] %v2805_v62  ;;  %v2810_v63 = vld [vmem:[%s2559_s29 + $0x1f8] sm:$0xff]  ;;  %v2813_v0 = vld [vmem:[%s2559_s29 + $0x1f0] sm:$0xff] }
  0x68   : > { %3619 = vst [vmem:[#allocation21_spill] sm:$0xff] %v2813_v0 }
  0x6b   : > { %529 = vperm.xlu1 %2247, %v2610_v13   ;;  %524 = vperm.xlu0 %2246, %v2613_v14  }
  0x6f   : > { %539 = vperm.xlu1 %2247, %v2618_v15   ;;  %534 = vperm.xlu0 %2246, %v2621_v16  }
  0x73   : > { %549 = vperm.xlu1 %2247, %v2626_v17   ;;  %544 = vperm.xlu0 %2246, %v2629_v18  }
  0x77   : > { %559 = vperm.xlu1 %2247, %v2634_v19   ;;  %554 = vperm.xlu0 %2246, %v2637_v20  }
  0x7b   : > { %569 = vperm.xlu1 %2247, %v2642_v21   ;;  %564 = vperm.xlu0 %2246, %v2645_v22  }
  0x7f   : > { %579 = vperm.xlu1 %2247, %v2650_v23   ;;  %574 = vperm.xlu0 %2246, %v2653_v24  }
  0x83   : > { %589 = vperm.xlu1 %2247, %v2658_v25   ;;  %584 = vperm.xlu0 %2246, %v2661_v26  }
  0x87   : > { %599 = vperm.xlu1 %2247, %v2666_v27   ;;  %594 = vperm.xlu0 %2246, %v2669_v28  }
  0x8b   : > { %609 = vperm.xlu1 %2247, %v2674_v29   ;;  %604 = vperm.xlu0 %2246, %v2677_v30  }
  0x8f   : > { %619 = vperm.xlu1 %2247, %v2682_v31   ;;  %614 = vperm.xlu0 %2246, %v2685_v32  }
  0x93   : > { %629 = vperm.xlu1 %2247, %v2690_v33   ;;  %624 = vperm.xlu0 %2246, %v2693_v34  }
  0x97   : > { %639 = vperm.xlu1 %2247, %v2698_v35   ;;  %634 = vperm.xlu0 %2246, %v2701_v36  }
  0x9b   : > { %649 = vperm.xlu1 %2247, %v2706_v37   ;;  %644 = vperm.xlu0 %2246, %v2709_v38  }
  0x9f   : > { %659 = vperm.xlu1 %2247, %v2714_v39   ;;  %654 = vperm.xlu0 %2246, %v2717_v40  }
  0xa3   : > { %669 = vperm.xlu1 %2247, %v2722_v41   ;;  %664 = vperm.xlu0 %2246, %v2725_v42  }
  0xa7   : > { %679 = vperm.xlu1 %2247, %v2730_v43   ;;  %674 = vperm.xlu0 %2246, %v2733_v44  }
  0xab   : > { %689 = vperm.xlu1 %2247, %v2738_v45   ;;  %684 = vperm.xlu0 %2246, %v2741_v46  }
  0xaf   : > { %699 = vperm.xlu1 %2247, %v2746_v47   ;;  %694 = vperm.xlu0 %2246, %v2749_v48  }
  0xb3   : > { %709 = vperm.xlu1 %2247, %v2754_v49   ;;  %704 = vperm.xlu0 %2246, %v2757_v50  }
  0xb7   : > { %719 = vperm.xlu1 %2247, %v2762_v51   ;;  %714 = vperm.xlu0 %2246, %v2765_v52  }
  0xbb   : > { %729 = vperm.xlu1 %2247, %v2770_v53   ;;  %724 = vperm.xlu0 %2246, %v2773_v54  }
  0xbf   : > { %739 = vperm.xlu1 %2247, %v2778_v55   ;;  %734 = vperm.xlu0 %2246, %v2781_v56  }
  0xc3   : > { %749 = vperm.xlu1 %2247, %v2786_v57   ;;  %744 = vperm.xlu0 %2246, %v2789_v58  }
  0xc7   : > { %759 = vperm.xlu1 %2247, %v2794_v59   ;;  %754 = vperm.xlu0 %2246, %v2797_v60   ;;  %v3582_v60 = vmov 2  }
  0xcb   : > { %769 = vperm.xlu1 %2247, %v2802_v61   ;;  %764 = vperm.xlu0 %2246, %v2805_v62  }
  0xcf   : > { %779 = vperm.xlu1 %2247, %v2810_v63   ;;  %774 = vperm.xlu0 %2246, %v2813_v0  }
  0xd2   : > { %v2817_v47 = vpop.permute.xlu1 %474  ;;  %v2819_v58 = vpop.permute.xlu0 %464 }
  0xd3   : > { %3620 = vst [vmem:[#allocation22_spill] sm:$0xff] %v2817_v47  ;;  %3621 = vst [vmem:[#allocation23_spill] sm:$0xff] %v2819_v58  ;;  %2249 = vset.pattern.permute.xlu1 %v3582_v60  ;;  %2248 = vset.pattern.permute.xlu0 %v3582_v60 }
  0xd4   : > { %858 = vperm.xlu1 %2249, %v2573_v4   ;;  %854 = vperm.xlu0 %2248, %v2565_v2  }
  0xd6   : > { %v2825_v62 = vpop.permute.xlu1 %479  ;;  %v2827_v56 = vpop.permute.xlu0 %469 }
  0xd7   : > { %3622 = vst [vmem:[#allocation24_spill] sm:$0xff] %v2825_v62  ;;  %3623 = vst [vmem:[#allocation25_spill] sm:$0xff] %v2827_v56 }
  0xd8   : > { %862 = vperm.xlu1 %2249, %v2562_v1   ;;  %866 = vperm.xlu0 %2248, %v2570_v3  }
  0xda   : > { %v2831_v47 = vpop.permute.xlu1 %489  ;;  %v2833_v58 = vpop.permute.xlu0 %484 }
  0xdb   : > { %3624 = vst [vmem:[#allocation26_spill] sm:$0xff] %v2831_v47  ;;  %3625 = vst [vmem:[#allocation27_spill] sm:$0xff] %v2833_v58 }
  0xdc   : > { %870 = vperm.xlu1 %2249, %v2581_v6   ;;  %874 = vperm.xlu0 %2248, %v2578_v5  }
  0xde   : > { %v2837_v60 = vpop.permute.xlu1 %499  ;;  %v2839_v0 = vpop.permute.xlu0 %494 }
  0xdf   : > { %3626 = vst [vmem:[#allocation28_spill] sm:$0xff] %v2837_v60  ;;  %3627 = vst [vmem:[#allocation29_spill] sm:$0xff] %v2839_v0 }
  0xe0   : > { %878 = vperm.xlu1 %2249, %v2589_v8   ;;  %882 = vperm.xlu0 %2248, %v2586_v7  }
  0xe2   : > { %v2843_v62 = vpop.permute.xlu1 %509  ;;  %v2845_v56 = vpop.permute.xlu0 %504 }
  0xe3   : > { %3628 = vst [vmem:[#allocation30_spill] sm:$0xff] %v2843_v62  ;;  %3629 = vst [vmem:[#allocation31_spill] sm:$0xff] %v2845_v56 }
  0xe4   : > { %886 = vperm.xlu1 %2249, %v2597_v10   ;;  %890 = vperm.xlu0 %2248, %v2594_v9  }
  0xe6   : > { %v2849_v58 = vpop.permute.xlu1 %519  ;;  %v2851_v47 = vpop.permute.xlu0 %514 }
  0xe7   : > { %3630 = vst [vmem:[#allocation32_spill] sm:$0xff] %v2849_v58  ;;  %3631 = vst [vmem:[#allocation33_spill] sm:$0xff] %v2851_v47 }
  0xe8   : > { %894 = vperm.xlu1 %2249, %v2605_v12   ;;  %898 = vperm.xlu0 %2248, %v2602_v11  }
  0xea   : > { %v2855_v0 = vpop.permute.xlu1 %529  ;;  %v2857_v60 = vpop.permute.xlu0 %524 }
  0xeb   : > { %3632 = vst [vmem:[#allocation34_spill] sm:$0xff] %v2855_v0  ;;  %3633 = vst [vmem:[#allocation35_spill] sm:$0xff] %v2857_v60 }
  0xec   : > { %902 = vperm.xlu1 %2249, %v2613_v14   ;;  %906 = vperm.xlu0 %2248, %v2610_v13  }
  0xee   : > { %v2861_v56 = vpop.permute.xlu1 %539  ;;  %v2863_v62 = vpop.permute.xlu0 %534 }
  0xef   : > { %3634 = vst [vmem:[#allocation36_spill] sm:$0xff] %v2861_v56  ;;  %3635 = vst [vmem:[#allocation37_spill] sm:$0xff] %v2863_v62 }
  0xf0   : > { %910 = vperm.xlu1 %2249, %v2621_v16   ;;  %914 = vperm.xlu0 %2248, %v2618_v15  }
  0xf2   : > { %v2867_v47 = vpop.permute.xlu1 %549  ;;  %v2869_v58 = vpop.permute.xlu0 %544 }
  0xf4   : > { %918 = vperm.xlu1 %2249, %v2629_v18   ;;  %922 = vperm.xlu0 %2248, %v2626_v17  }
  0xf6   : > { %v2873_v0 = vpop.permute.xlu1 %559  ;;  %v2875_v60 = vpop.permute.xlu0 %554 }
  0xf7   : > { %3636 = vst [vmem:[#allocation38_spill] sm:$0xff] %v2873_v0  ;;  %3637 = vst [vmem:[#allocation39_spill] sm:$0xff] %v2875_v60 }
  0xf8   : > { %926 = vperm.xlu1 %2249, %v2637_v20   ;;  %930 = vperm.xlu0 %2248, %v2634_v19  }
  0xfa   : > { %v2879_v56 = vpop.permute.xlu1 %569  ;;  %v2881_v62 = vpop.permute.xlu0 %564 }
  0xfb   : > { %3638 = vst [vmem:[#allocation40_spill] sm:$0xff] %v2879_v56  ;;  %3639 = vst [vmem:[#allocation41_spill] sm:$0xff] %v2881_v62 }
  0xfc   : > { %934 = vperm.xlu1 %2249, %v2645_v22   ;;  %938 = vperm.xlu0 %2248, %v2642_v21  }
  0xfe   : > { %v2885_v15 = vpop.permute.xlu1 %579  ;;  %v2887_v13 = vpop.permute.xlu0 %574 }
  0xff   : > { %3640 = vst [vmem:[#allocation42_spill] sm:$0xff] %v2885_v15  ;;  %3641 = vst [vmem:[#allocation43_spill] sm:$0xff] %v2887_v13 }
 0x100   : > { %942 = vperm.xlu1 %2249, %v2653_v24   ;;  %946 = vperm.xlu0 %2248, %v2650_v23  }
 0x102   : > { %v2891_v60 = vpop.permute.xlu1 %589  ;;  %v2893_v0 = vpop.permute.xlu0 %584 }
 0x103   : > { %3642 = vst [vmem:[#allocation44_spill] sm:$0xff] %v2891_v60  ;;  %3643 = vst [vmem:[#allocation45_spill] sm:$0xff] %v2893_v0 }
 0x104   : > { %950 = vperm.xlu1 %2249, %v2661_v26   ;;  %954 = vperm.xlu0 %2248, %v2658_v25  }
 0x106   : > { %v2897_v56 = vpop.permute.xlu1 %599  ;;  %v2899_v62 = vpop.permute.xlu0 %594 }
 0x107   : > { %3644 = vst [vmem:[#allocation46_spill] sm:$0xff] %v2897_v56  ;;  %3645 = vst [vmem:[#allocation47_spill] sm:$0xff] %v2899_v62 }
 0x108   : > { %958 = vperm.xlu1 %2249, %v2669_v28   ;;  %962 = vperm.xlu0 %2248, %v2666_v27  }
 0x10a   : > { %v2903_v15 = vpop.permute.xlu1 %609  ;;  %v2905_v13 = vpop.permute.xlu0 %604 }
 0x10b   : > { %3646 = vst [vmem:[#allocation48_spill] sm:$0xff] %v2903_v15  ;;  %3647 = vst [vmem:[#allocation49_spill] sm:$0xff] %v2905_v13 }
 0x10c   : > { %966 = vperm.xlu1 %2249, %v2677_v30   ;;  %970 = vperm.xlu0 %2248, %v2674_v29  }
 0x10e   : > { %v2909_v60 = vpop.permute.xlu1 %619  ;;  %v2911_v0 = vpop.permute.xlu0 %614 }
 0x10f   : > { %3648 = vst [vmem:[#allocation50_spill] sm:$0xff] %v2909_v60  ;;  %3649 = vst [vmem:[#allocation51_spill] sm:$0xff] %v2911_v0 }
 0x110   : > { %974 = vperm.xlu1 %2249, %v2685_v32   ;;  %978 = vperm.xlu0 %2248, %v2682_v31  }
 0x112   : > { %v2915_v56 = vpop.permute.xlu1 %629  ;;  %v2917_v62 = vpop.permute.xlu0 %624 }
 0x113   : > { %3650 = vst [vmem:[#allocation52_spill] sm:$0xff] %v2915_v56 }
 0x114   : > { %982 = vperm.xlu1 %2249, %v2693_v34   ;;  %986 = vperm.xlu0 %2248, %v2690_v33  }
 0x116   : > { %v2921_v15 = vpop.permute.xlu1 %639  ;;  %v2923_v13 = vpop.permute.xlu0 %634 }
 0x117   : > { %3651 = vst [vmem:[#allocation53_spill] sm:$0xff] %v2921_v15  ;;  %3652 = vst [vmem:[#allocation54_spill] sm:$0xff] %v2923_v13 }
 0x118   : > { %990 = vperm.xlu1 %2249, %v2701_v36   ;;  %994 = vperm.xlu0 %2248, %v2698_v35  }
 0x11a   : > { %v2927_v60 = vpop.permute.xlu1 %649  ;;  %v2929_v0 = vpop.permute.xlu0 %644 }
 0x11b   : > { %3653 = vst [vmem:[#allocation55_spill] sm:$0xff] %v2927_v60  ;;  %3654 = vst [vmem:[#allocation56_spill] sm:$0xff] %v2929_v0 }
 0x11c   : > { %998 = vperm.xlu1 %2249, %v2709_v38   ;;  %1002 = vperm.xlu0 %2248, %v2706_v37  }
 0x11e   : > { %v2933_v31 = vpop.permute.xlu1 %659  ;;  %v2935_v29 = vpop.permute.xlu0 %654 }
 0x11f   : > { %3655 = vst [vmem:[#allocation57_spill] sm:$0xff] %v2933_v31  ;;  %3656 = vst [vmem:[#allocation58_spill] sm:$0xff] %v2935_v29 }
 0x120   : > { %1006 = vperm.xlu1 %2249, %v2717_v40   ;;  %1010 = vperm.xlu0 %2248, %v2714_v39  }
 0x122   : > { %v2939_v15 = vpop.permute.xlu1 %669  ;;  %v2941_v13 = vpop.permute.xlu0 %664 }
 0x123   : > { %3657 = vst [vmem:[#allocation59_spill] sm:$0xff] %v2939_v15  ;;  %3658 = vst [vmem:[#allocation60_spill] sm:$0xff] %v2941_v13 }
 0x124   : > { %1014 = vperm.xlu1 %2249, %v2725_v42   ;;  %1018 = vperm.xlu0 %2248, %v2722_v41  }
 0x126   : > { %v2945_v0 = vpop.permute.xlu1 %679  ;;  %v2947_v60 = vpop.permute.xlu0 %674 }
 0x127   : > { %3659 = vst [vmem:[#allocation61_spill] sm:$0xff] %v2945_v0  ;;  %3660 = vst [vmem:[#allocation62_spill] sm:$0xff] %v2947_v60 }
 0x128   : > { %1022 = vperm.xlu1 %2249, %v2733_v44   ;;  %1026 = vperm.xlu0 %2248, %v2730_v43  }
 0x12a   : > { %v2951_v29 = vpop.permute.xlu1 %689  ;;  %v2953_v31 = vpop.permute.xlu0 %684 }
 0x12b   : > { %3661 = vst [vmem:[#allocation63_spill] sm:$0xff] %v2951_v29  ;;  %3662 = vst [vmem:[#allocation64_spill] sm:$0xff] %v2953_v31 }
 0x12c   : > { %1030 = vperm.xlu1 %2249, %v2741_v46   ;;  %1034 = vperm.xlu0 %2248, %v2738_v45   ;;  %v3590_v45 = vmov 0  }
 0x12e   : > { %v2957_v13 = vpop.permute.xlu1 %699  ;;  %v2959_v15 = vpop.permute.xlu0 %694 }
 0x12f   : > { %3663 = vst [vmem:[#allocation65_spill] sm:$0xff] %v2957_v13  ;;  %3664 = vst [vmem:[#allocation66_spill] sm:$0xff] %v2959_v15 }
 0x130   : > { %1038 = vperm.xlu1 %2249, %v2749_v48   ;;  %1046 = vperm.xlu0 %2248, %v2757_v50  }
 0x132   : > { %v2963_v60 = vpop.permute.xlu1 %709  ;;  %v2965_v0 = vpop.permute.xlu0 %704 }
 0x134   : > { %1050 = vperm.xlu1 %2249, %v2754_v49   ;;  %1054 = vperm.xlu0 %2248, %v2765_v52  }
 0x136   : > { %v2969_v29 = vpop.permute.xlu1 %719  ;;  %v2971_v31 = vpop.permute.xlu0 %714 }
 0x137   : > { %3665 = vst [vmem:[#allocation67_spill] sm:$0xff] %v2969_v29  ;;  %3666 = vst [vmem:[#allocation68_spill] sm:$0xff] %v2971_v31 }
 0x138   : > { %1058 = vperm.xlu1 %2249, %v2762_v51   ;;  %1066 = vperm.xlu0 %2248, %v2770_v53  }
 0x13a   : > { %v2975_v13 = vpop.permute.xlu1 %729  ;;  %v2977_v15 = vpop.permute.xlu0 %724 }
 0x13b   : > { %3667 = vst [vmem:[#allocation69_spill] sm:$0xff] %v2975_v13  ;;  %3668 = vst [vmem:[#allocation70_spill] sm:$0xff] %v2977_v15 }
 0x13c   : > { %2250 = vset.pattern.permute.xlu1 %v3590_v45  ;;  %1074 = vperm.xlu0 %2248, %v2778_v55  }
 0x13d   : > { %1312 = vperm.xlu1 %2250, %v2626_v17  }
 0x13e   : > { %v2982_v56 = vpop.permute.xlu1 %739  ;;  %v2984_v29 = vpop.permute.xlu0 %734 }
 0x13f   : > { %3669 = vst [vmem:[#allocation71_spill] sm:$0xff] %v2982_v56 }
 0x140   : > { %1082 = vperm.xlu0 %2248, %v2786_v57  }
 0x141   : > { %1436 = vperm.xlu1 %2250, %v2757_v50   ;;  %v3675_v50 = vmov 2  }
 0x142   : > { %v2988_v31 = vpop.permute.xlu1 %749  ;;  %v2990_v13 = vpop.permute.xlu0 %744 }
 0x143   : > { %3670 = vst [vmem:[#allocation72_spill] sm:$0xff] %v2988_v31 }
 0x144   : > { %1090 = vperm.xlu0 %2248, %v2794_v59  }
 0x145   : > { %1244 = vperm.xlu1 %2250, %v2565_v2  }
 0x146   : > { %v2994_v45 = vpop.permute.xlu1 %759  ;;  %v2996_v15 = vpop.permute.xlu0 %754 }
 0x147   : > { %3671 = vst [vmem:[#allocation73_spill] sm:$0xff] %v2994_v45  ;;  %3672 = vst [vmem:[#allocation74_spill] sm:$0xff] %v2996_v15  ;;  %v3678_v45 = vmov 0   ;;  %v3683_v15 = vld [vmem:[#allocation17_spill] sm:$0xff] }
 0x148   : > { %1098 = vperm.xlu0 %2248, %v2802_v61  }
 0x149   : > { %1372 = vperm.xlu1 %2250, %v2693_v34  }
 0x14a   : > { %v3000_v17 = vpop.permute.xlu1 %769  ;;  %v3002_v56 = vpop.permute.xlu0 %764 }
 0x14b   : > { %3673 = vst [vmem:[#allocation75_spill] sm:$0xff] %v3000_v17  ;;  %3674 = vst [vmem:[#allocation76_spill] sm:$0xff] %v3002_v56 }
 0x14c   : > { %1106 = vperm.xlu0 %2248, %v2810_v63  }
 0x14d   : > { %2251 = vset.pattern.permute.xlu1 %v3675_v50 }
 0x14e   : > { %v3006_v31 = vpop.permute.xlu1 %779  ;;  %1062 = vperm.xlu1 %2251, %v2773_v54   ;;  %v3009_v2 = vpop.permute.xlu0 %774 }
 0x14f   : > { %3676 = vst [vmem:[#allocation77_spill] sm:$0xff] %v3006_v31  ;;  %3677 = vst [vmem:[#allocation78_spill] sm:$0xff] %v3009_v2 }
 0x150   : > { %2262 = vset.pattern.permute.xlu0 %v3678_v45 }
 0x151   : > { %1308 = vperm.xlu0 %2262, %v2629_v18  }
 0x152   : > { %2252 = vset.pattern.permute.xlu1 %v3678_v45 }
 0x153   : > { %v3014_v34 = vpop.permute.xlu1 %858  ;;  %1316 = vperm.xlu1 %2252, %v2637_v20   ;;  %v3017_v17 = vpop.permute.xlu0 %854 }
 0x155   : > { %1440 = vperm.xlu0 %2262, %v2754_v49  }
 0x157   : > { %v3020_v56 = vpop.permute.xlu1 %862  ;;  %1320 = vperm.xlu1 %2252, %v2634_v19   ;;  %v3023_v31 = vpop.permute.xlu0 %866 }
 0x159   : > { %1248 = vperm.xlu0 %2262, %v2573_v4  }
 0x15b   : > { %v3026_v2 = vpop.permute.xlu1 %870  ;;  %1448 = vperm.xlu1 %2252, %v2762_v51   ;;  %v3029_v18 = vpop.permute.xlu0 %874 }
 0x15d   : > { %1376 = vperm.xlu0 %2262, %v2690_v33  }
 0x15f   : > { %v3032_v20 = vpop.permute.xlu1 %878  ;;  %1252 = vperm.xlu1 %2252, %v2562_v1   ;;  %v3035_v49 = vpop.permute.xlu0 %882 }
 0x161   : > { %1444 = vperm.xlu0 %2262, %v2765_v52  }
 0x163   : > { %v3038_v19 = vpop.permute.xlu1 %886  ;;  %1380 = vperm.xlu1 %2252, %v2701_v36   ;;  %v3041_v4 = vpop.permute.xlu0 %890 }
 0x164   : > { %3679 = vst [vmem:[#allocation79_spill] sm:$0xff] %v3038_v19  ;;  %3680 = vst [vmem:[#allocation80_spill] sm:$0xff] %v3041_v4 }
 0x165   : > { %1256 = vperm.xlu0 %2262, %v2570_v3  }
 0x167   : > { %v3044_v51 = vpop.permute.xlu1 %894  ;;  %2253 = vset.pattern.permute.xlu1 %v3675_v50  ;;  %v3047_v33 = vpop.permute.xlu0 %898 }
 0x168   : > { %3681 = vst [vmem:[#allocation81_spill] sm:$0xff] %v3044_v51  ;;  %3682 = vst [vmem:[#allocation82_spill] sm:$0xff] %v3047_v33  ;;  %1070 = vperm.xlu1 %2253, %v3683_v15  }
 0x169   : > { %1384 = vperm.xlu0 %2262, %v2698_v35  }
 0x16b   : > { %v3051_v1 = vpop.permute.xlu1 %902  ;;  %v3053_v52 = vpop.permute.xlu0 %906 }
 0x16c   : > { %3684 = vst [vmem:[#allocation17_spill] sm:$0xff] %v3051_v1  ;;  %3685 = vst [vmem:[#allocation83_spill] sm:$0xff] %v3053_v52  ;;  %2254 = vset.pattern.permute.xlu1 %v3678_v45  ;;  %v3695_v1 = vld [vmem:[#allocation19_spill] sm:$0xff] }
 0x16d   : > { %1324 = vperm.xlu1 %2254, %v2645_v22   ;;  %1452 = vperm.xlu0 %2262, %v2773_v54  }
 0x16f   : > { %v3058_v3 = vpop.permute.xlu1 %910  ;;  %v3060_v36 = vpop.permute.xlu0 %914 }
 0x170   : > { %3686 = vst [vmem:[#allocation84_spill] sm:$0xff] %v3058_v3  ;;  %3687 = vst [vmem:[#allocation85_spill] sm:$0xff] %v3060_v36 }
 0x171   : > { %1328 = vperm.xlu1 %2254, %v2642_v21   ;;  %1264 = vperm.xlu0 %2262, %v2578_v5  }
 0x173   : > { %v3064_v51 = vpop.permute.xlu1 %918  ;;  %v3066_v35 = vpop.permute.xlu0 %922 }
 0x175   : > { %1456 = vperm.xlu1 %2254, %v2770_v53   ;;  %1392 = vperm.xlu0 %2262, %v2706_v37   ;;  %v3688_v37 = vld [vmem:[#allocation18_spill] sm:$0xff] }
 0x177   : > { %v3070_v52 = vpop.permute.xlu1 %926  ;;  %v3072_v22 = vpop.permute.xlu0 %930 }
 0x179   : > { %1260 = vperm.xlu1 %2254, %v2581_v6   ;;  %1460 = vperm.xlu0 %2262, %v3683_v15  }
 0x17b   : > { %v3076_v54 = vpop.permute.xlu1 %934  ;;  %v3078_v21 = vpop.permute.xlu0 %938 }
 0x17d   : > { %1388 = vperm.xlu1 %2254, %v2709_v38   ;;  %1272 = vperm.xlu0 %2262, %v2586_v7  }
 0x17f   : > { %v3082_v5 = vpop.permute.xlu1 %942  ;;  %v3084_v53 = vpop.permute.xlu0 %946 }
 0x181   : > { %2255 = vset.pattern.permute.xlu1 %v3675_v50  ;;  %1400 = vperm.xlu0 %2262, %v2714_v39  }
 0x182   : > { %1078 = vperm.xlu1 %2255, %v3688_v37  }
 0x183   : > { %v3089_v6 = vpop.permute.xlu1 %950  ;;  %v3091_v15 = vpop.permute.xlu0 %954 }
 0x185   : > { %1468 = vperm.xlu0 %2262, %v3688_v37  }
 0x186   : > { %2256 = vset.pattern.permute.xlu1 %v3678_v45 }
 0x187   : > { %v3095_v38 = vpop.permute.xlu1 %958  ;;  %1332 = vperm.xlu1 %2256, %v2653_v24   ;;  %v3098_v7 = vpop.permute.xlu0 %962 }
 0x188   : > { %3689 = vst [vmem:[#allocation18_spill] sm:$0xff] %v3095_v38  ;;  %3690 = vst [vmem:[#allocation86_spill] sm:$0xff] %v3098_v7 }
 0x189   : > { %1280 = vperm.xlu0 %2262, %v2594_v9  }
 0x18b   : > { %v3101_v36 = vpop.permute.xlu1 %966  ;;  %1336 = vperm.xlu1 %2256, %v2650_v23   ;;  %v3104_v39 = vpop.permute.xlu0 %970 }
 0x18c   : > { %3691 = vst [vmem:[#allocation87_spill] sm:$0xff] %v3101_v36  ;;  %3692 = vst [vmem:[#allocation88_spill] sm:$0xff] %v3104_v39 }
 0x18d   : > { %1408 = vperm.xlu0 %2262, %v2722_v41  }
 0x18f   : > { %v3107_v3 = vpop.permute.xlu1 %974  ;;  %1464 = vperm.xlu1 %2256, %v2778_v55   ;;  %v3110_v37 = vpop.permute.xlu0 %978 }
 0x190   : > { %3693 = vst [vmem:[#allocation89_spill] sm:$0xff] %v3107_v3  ;;  %3694 = vst [vmem:[#allocation90_spill] sm:$0xff] %v3110_v37 }
 0x191   : > { %1476 = vperm.xlu0 %2262, %v3695_v1  }
 0x193   : > { %v3113_v24 = vpop.permute.xlu1 %982  ;;  %1268 = vperm.xlu1 %2256, %v2589_v8   ;;  %v3116_v9 = vpop.permute.xlu0 %986  ;;  %v3696_v8 = vld [vmem:[#allocation20_spill] sm:$0xff] }
 0x195   : > { %1288 = vperm.xlu0 %2262, %v2602_v11  }
 0x197   : > { %v3119_v23 = vpop.permute.xlu1 %990  ;;  %1396 = vperm.xlu1 %2256, %v2717_v40   ;;  %v3122_v41 = vpop.permute.xlu0 %994 }
 0x199   : > { %1416 = vperm.xlu0 %2262, %v2730_v43  }
 0x19b   : > { %v3125_v55 = vpop.permute.xlu1 %998  ;;  %2257 = vset.pattern.permute.xlu1 %v3675_v50  ;;  %v3128_v37 = vpop.permute.xlu0 %1002 }
 0x19c   : > { %1086 = vperm.xlu1 %2257, %v3695_v1  }
 0x19d   : > { %1484 = vperm.xlu0 %2262, %v3696_v8  }
 0x19f   : > { %v3132_v3 = vpop.permute.xlu1 %1006  ;;  %v3134_v11 = vpop.permute.xlu0 %1010 }
 0x1a0   : > { %2258 = vset.pattern.permute.xlu1 %v3678_v45 }
 0x1a1   : > { %1340 = vperm.xlu1 %2258, %v2661_v26   ;;  %1292 = vperm.xlu0 %2262, %v2613_v14   ;;  %v3703_v14 = vld [vmem:[#allocation21_spill] sm:$0xff] }
 0x1a3   : > { %v3139_v40 = vpop.permute.xlu1 %1014  ;;  %v3141_v43 = vpop.permute.xlu0 %1018 }
 0x1a4   : > { %3697 = vst [vmem:[#allocation19_spill] sm:$0xff] %v3139_v40  ;;  %3698 = vst [vmem:[#allocation20_spill] sm:$0xff] %v3141_v43 }
 0x1a5   : > { %1344 = vperm.xlu1 %2258, %v2658_v25   ;;  %1420 = vperm.xlu0 %2262, %v2741_v46  }
 0x1a7   : > { %v3145_v1 = vpop.permute.xlu1 %1022  ;;  %v3147_v39 = vpop.permute.xlu0 %1026 }
 0x1a8   : > { %3699 = vst [vmem:[#allocation91_spill] sm:$0xff] %v3145_v1  ;;  %3700 = vst [vmem:[#allocation92_spill] sm:$0xff] %v3147_v39  ;;  %v3198_v39 = vld [vmem:[%s376_s10] ss:$0 sm:$0xff]  ;;  %s1638_s10 = sadd.s32 %s2016_s30, %s1633_s9  ;;  %s1654_s30 = sld [smem:[#allocation5 + %s1653_s15]] }
 0x1a9   : > { %1472 = vperm.xlu1 %2258, %v2786_v57   ;;  %1364 = vperm.xlu0 %2262, %v2685_v32   ;;  %v805_v33 = vmul.f32 %v3198_v39, %v2867_v47  ;;  %s3318_s16 = sld [smem:[#allocation2 + %s1638_s10]] }
 0x1ab   : > { %v3151_v36 = vpop.permute.xlu1 %1030  ;;  %v3153_v26 = vpop.permute.xlu0 %1034 }
 0x1ac   : > { %3701 = vst [vmem:[#allocation93_spill] sm:$0xff] %v3151_v36  ;;  %3702 = vst [vmem:[#allocation94_spill] sm:$0xff] %v3153_v26 }
 0x1ad   : > { %1276 = vperm.xlu1 %2258, %v2597_v10   ;;  %1492 = vperm.xlu0 %2262, %v3703_v14  }
 0x1af   : > { %v3157_v25 = vpop.permute.xlu1 %1038  ;;  %v1047_v46 = vpop.permute.xlu0 %1046  ;;  %s1662_s1 = smul.f32 %s1661_s14, %s3318_s16 }
 0x1b0   : > { %3704 = vst [vmem:[#allocation21_spill] sm:$0xff] %v3157_v25 }
 0x1b1   : > { %1404 = vperm.xlu1 %2258, %v2725_v42   ;;  %1300 = vperm.xlu0 %2262, %v2621_v16  }
 0x1b3   : > { %v1051_v57 = vpop.permute.xlu1 %1050  ;;  %v3161_v32 = vpop.permute.xlu0 %1054 }
 0x1b5   : > { %2259 = vset.pattern.permute.xlu1 %v3675_v50  ;;  %1428 = vperm.xlu0 %2262, %v2749_v48  }
 0x1b6   : > { %1094 = vperm.xlu1 %2259, %v3696_v8  }
 0x1b7   : > { %v3166_v10 = vpop.permute.xlu1 %1058  ;;  %v3168_v26 = vpop.permute.xlu0 %1066 }
 0x1ba   : > { %2260 = vset.pattern.permute.xlu1 %v3678_v45 }
 0x1bb   : > { %1348 = vperm.xlu1 %2260, %v2669_v28   ;;  %v3172_v42 = vpop.permute.xlu0 %1074  ;;  %v3192_v28 = vld [vmem:[%s386_s18] ss:$0 sm:$0xff]  ;;  %s3306_s18 = sld [smem:[#allocation2 + %s2383_s24]] }
 0x1bc   : > { %v1313_v16 = vpop.permute.xlu1 %1312  ;;  %v1163_v7 = vmul.f32 %v3192_v28, %v1047_v46  ;;  %v1164_v47 = vmul.f32 %v3192_v28, %v1051_v57  ;;  %v1134_v46 = vmul.f32 %v3192_v28, %v3072_v22  ;;  %v3711_v57 = vld [vmem:[#allocation38_spill] sm:$0xff]  ;;  %v3712_v22 = vld [vmem:[#allocation25_spill] sm:$0xff] }
 0x1bf   : > { %1352 = vperm.xlu1 %2260, %v2666_v27   ;;  %v3176_v25 = vpop.permute.xlu0 %1082 }
 0x1c0   : > { %v1437_v48 = vpop.permute.xlu1 %1436 }
 0x1c1   : > { %s1655_s9 = smul.f32 %s1654_s30, %s3306_s18 }
 0x1c3   : > { %1480 = vperm.xlu1 %2260, %v2794_v59   ;;  %v3181_v8 = vpop.permute.xlu0 %1090  ;;  %v1132_v59 = vmul.f32 %v3192_v28, %v3066_v35  ;;  %v836_v35 = vmul.f32 %v3198_v39, %v2965_v0 }
 0x1c4   : > { %3705 = vst [vmem:[#allocation95_spill] sm:$0xff] %v3181_v8  ;;  %v1245_v36 = vpop.permute.xlu1 %1244  ;;  %v1131_v8 = vmul.f32 %v3192_v28, %v3064_v51 }
 0x1c5   : > { %v1196_v38 = vadd.f32 %v1132_v59, %v805_v33  ;;  %v837_v33 = vmul.f32 %v3198_v39, %v2963_v60  ;;  %v1227_v59 = vadd.f32 %v1163_v7, %v836_v35  ;;  %v789_v7 = vmul.f32 %v3198_v39, %v3712_v22  ;;  %v3713_v35 = vld [vmem:[#allocation39_spill] sm:$0xff] }
 0x1c7   : > { %1284 = vperm.xlu1 %2260, %v2605_v12   ;;  %v3190_v27 = vpop.permute.xlu0 %1098  ;;  %v1516_v43 = vadd.f32 %v1313_v16, %v1196_v38  ;;  %v807_v16 = vmul.f32 %v3198_v39, %v3711_v57  ;;  %v1547_v60 = vadd.f32 %v1437_v48, %v1227_v59  ;;  %v1228_v4 = vadd.f32 %v1164_v47, %v837_v33 }
 0x1c8   : > { %3708 = vst [vmem:[#allocation96_spill] sm:$0xff] %v3190_v27  ;;  %v3194_v1 = vpop.permute.xlu1 %1372  ;;  %v804_v27 = vmul.f32 %v3198_v39, %v2869_v58  ;;  %v820_v48 = vmul.f32 %v3198_v39, %v2917_v62  ;;  %v1148_v47 = vmul.f32 %v3192_v28, %v3116_v9 }
 0x1ca   : > { %v1195_v51 = vadd.f32 %v1131_v8, %v804_v27  ;;  %v1580_v27 = vmax.f32 %v1516_v43, 0.0 }
 0x1cb   : > { %1412 = vperm.xlu1 %2260, %v2733_v44   ;;  %v3205_v12 = vpop.permute.xlu0 %1106  ;;  %v1115_v44 = vmul.f32 %v3192_v28, %v3017_v17  ;;  %v1116_v17 = vmul.f32 %v3192_v28, %v3014_v34  ;;  %v1147_v34 = vmul.f32 %v3192_v28, %v3113_v24  ;;  %v3714_v24 = vld [vmem:[#allocation52_spill] sm:$0xff] }
 0x1cc   : > { %3709 = vst [vmem:[#allocation97_spill] sm:$0xff] %v3205_v12  ;;  %v3710_v12 = vld [vmem:[#allocation23_spill] sm:$0xff] }
 0x1cd   : > { %v3210_v40 = vpop.permute.xlu1 %1062  ;;  %v788_v38 = vmul.f32 %v3198_v39, %v3710_v12  ;;  %v806_v12 = vmul.f32 %v3198_v39, %v3713_v35  ;;  %v1211_v62 = vadd.f32 %v1147_v34, %v820_v48 }
 0x1cf   : > { %2261 = vset.pattern.permute.xlu1 %v3675_v50 }
 0x1d0   : > { %1102 = vperm.xlu1 %2261, %v3703_v14   ;;  %v1309_v58 = vpop.permute.xlu0 %1308  ;;  %v1133_v14 = vmul.f32 %v3192_v28, %v3070_v52  ;;  %v1198_v52 = vadd.f32 %v1134_v46, %v807_v16 }
 0x1d1   : > { %v1515_v0 = vadd.f32 %v1309_v58, %v1195_v51  ;;  %v1179_v51 = vadd.f32 %v1115_v44, %v788_v38  ;;  %v1180_v44 = vadd.f32 %v1116_v17, %v789_v7 }
 0x1d2   : > { %v1317_v8 = vpop.permute.xlu1 %1316  ;;  %v1197_v33 = vadd.f32 %v1133_v14, %v806_v12  ;;  %v3716_v14 = vld [vmem:[#allocation67_spill] sm:$0xff]  ;;  %v1165_v12 = vmul.f32 %v3192_v28, %v3161_v32 }
 0x1d3   : > { %v1579_v19 = vmax.f32 %v1515_v0, 0.0  ;;  %v1611_v0 = vmax.f32 %v1547_v60, 0.0  ;;  %v1499_v38 = vadd.f32 %v1245_v36, %v1179_v51  ;;  %v839_v17 = vmul.f32 %v3198_v39, %v3716_v14 }
 0x1d4   : > { %2263 = vset.pattern.permute.xlu1 %v3678_v45  ;;  %v1441_v58 = vpop.permute.xlu0 %1440 }
 0x1d5   : > { %v1548_v57 = vadd.f32 %v1441_v58, %v1228_v4  ;;  %1356 = vperm.xlu1 %2263, %v2677_v30   ;;  %v2087_v43 = vpack.c.bf16 %v1580_v27, %v1579_v19  ;;  %v821_v4 = vmul.f32 %v3198_v39, %v3714_v24  ;;  %v1517_v30 = vadd.f32 %v1317_v8, %v1197_v33  ;;  %v3715_v27 = vld [vmem:[#allocation13_spill] sm:$0xff] }
 0x1d6   : > { %v1321_v59 = vpop.permute.xlu1 %1320  ;;  %v1166_v19 = vmul.f32 %v3192_v28, %v3166_v10  ;;  %v1563_v51 = vmax.f32 %v1499_v38, 0.0  ;;  %v1531_v8 = vadd.f32 %v3194_v1, %v1211_v62  ;;  %v3717_v10 = vld [vmem:[#allocation68_spill] sm:$0xff]  ;;  %v1118_v1 = vmul.f32 %v3192_v28, %v3023_v31  ;;  %v3720_v62 = vld [vmem:[#allocation54_spill] sm:$0xff] }
 0x1d7   : > { %v1612_v22 = vmax.f32 %v1548_v57, 0.0  ;;  %v1518_v35 = vadd.f32 %v1321_v59, %v1198_v52  ;;  %2088 = vmatprep.subr.bf16.mxu0 %v2087_v43  ;;  %v1212_v7 = vadd.f32 %v1148_v47, %v821_v4  ;;  %v838_v34 = vmul.f32 %v3198_v39, %v3717_v10  ;;  %v3718_v59 = vld [vmem:[#allocation22_spill] sm:$0xff]  ;;  %v3719_v4 = vld [vmem:[#allocation24_spill] sm:$0xff] }
 0x1d8   : > { %v1249_v46 = vpop.permute.xlu0 %1248  ;;  %v1581_v57 = vmax.f32 %v1517_v30, 0.0  ;;  %v1117_v43 = vmul.f32 %v3192_v28, %v3020_v56  ;;  %v1230_v48 = vadd.f32 %v1166_v19, %v839_v17  ;;  %v790_v32 = vmul.f32 %v3198_v39, %v3718_v59 }
 0x1d9   : > { %v1500_v16 = vadd.f32 %v1249_v46, %v1180_v44  ;;  %1360 = vperm.xlu1 %2263, %v3715_v27   ;;  %v2119_v9 = vpack.c.bf16 %v1612_v22, %v1611_v0  ;;  %v1582_v36 = vmax.f32 %v1518_v35, 0.0  ;;  %v1595_v38 = vmax.f32 %v1531_v8, 0.0  ;;  %v3721_v27 = vld [vmem:[#allocation16_spill] sm:$0xff] }
 0x1da   : > { %v1449_v60 = vpop.permute.xlu1 %1448  ;;  %v1229_v24 = vadd.f32 %v1165_v12, %v838_v34  ;;  %v791_v56 = vmul.f32 %v3198_v39, %v3719_v4  ;;  %v1181_v46 = vadd.f32 %v1117_v43, %v790_v32  ;;  %v1150_v17 = vmul.f32 %v3192_v28, %v3122_v41  ;;  %v3722_v12 = vld [vmem:[#allocation53_spill] sm:$0xff] }
 0x1db   : > { %v1564_v58 = vmax.f32 %v1500_v16, 0.0  ;;  %2120 = vmatprep.subr.bf16.mxu1 %v2119_v9  ;;  %v2091_v44 = vpack.c.bf16 %v1582_v36, %v1581_v57  ;;  %v1550_v22 = vadd.f32 %v1449_v60, %v1230_v48  ;;  %v822_v16 = vmul.f32 %v3198_v39, %v3720_v62  ;;  %v3724_v32 = vld [vmem:[#allocation41_spill] sm:$0xff] }
 0x1dc   : > { %v1377_v52 = vpop.permute.xlu0 %1376  ;;  %v1182_v14 = vadd.f32 %v1118_v1, %v791_v56  ;;  %v808_v1 = vmul.f32 %v3198_v39, %v3724_v32  ;;  %v2266_v32 = vld [vmem:[%s2559_s29 + $0x78] sm:$0xff]  ;;  %s1656_s29 = sadd.s32 1, %s1653_s15 }
 0x1dd   : > { %v1532_v33 = vadd.f32 %v1377_v52, %v1212_v7  ;;  %1488 = vperm.xlu1 %2263, %v2802_v61   ;;  %v2089_v47 = vpack.c.bf16 %v1564_v58, %v1563_v51  ;;  %v1149_v61 = vmul.f32 %v3192_v28, %v3119_v23  ;;  %v1614_v36 = vmax.f32 %v1550_v22, 0.0  ;;  %v3723_v52 = vld [vmem:[#allocation12_spill] sm:$0xff]  ;;  %s1657_s10 = sld [smem:[#allocation5 + %s1656_s29]]  ;;  %s366_s29 = scalar_lea.vmem [#allocation7], %s365_s2 }
 0x1de   : > { %v1253_v0 = vpop.permute.xlu1 %1252  ;;  %v823_v51 = vmul.f32 %v3198_v39, %v3722_v12  ;;  %s1844_s15 = sshll.u32 %s366_s29, 4  ;;  %s3510_s15 = int_to_ptr.vmem [resolvable:$true] %s1844_s15 }
 0x1df   : > { %v1596_v35 = vmax.f32 %v1532_v33, 0.0  ;;  %2090 = vmatpush3.bf16.msra.mxu0 %v2089_v47  ;;  %v1501_v60 = vadd.f32 %v1253_v0, %v1181_v46  ;;  %v1213_v8 = vadd.f32 %v1149_v61, %v822_v16  ;;  %v1135_v33 = vmul.f32 %v3192_v28, %v3076_v54  ;;  %v3727_v61 = vld [vmem:[#allocation70_spill] sm:$0xff] }
 0x1e0   : > { %v1445_v30 = vpop.permute.xlu0 %1444  ;;  %2092 = vmatprep.subr.bf16.mxu0 %v2091_v44  ;;  %v1214_v41 = vadd.f32 %v1150_v17, %v823_v51  ;;  %v1167_v54 = vmul.f32 %v3192_v28, %v3210_v40  ;;  %v1168_v46 = vmul.f32 %v3192_v28, %v3168_v26  ;;  %v3730_v26 = vld [vmem:[#allocation26_spill] sm:$0xff] }
 0x1e1   : > { %v1549_v19 = vadd.f32 %v1445_v30, %v1229_v24  ;;  %2264 = vset.pattern.permute.xlu1 %v3675_v50  ;;  %v2121_v31 = vpack.c.bf16 %v1596_v35, %v1595_v38  ;;  %v1565_v10 = vmax.f32 %v1501_v60, 0.0  ;;  %v3725_v38 = vld [vmem:[#allocation15_spill] sm:$0xff]  ;;  %v3726_v24 = vld [vmem:[#allocation40_spill] sm:$0xff]  ;;  %v1199_v30 = vadd.f32 %v1135_v33, %v808_v1 }
 0x1e2   : > { %1042 = vperm.xlu1 %2264, %v3721_v27   ;;  %v1381_v9 = vpop.permute.xlu1 %1380  ;;  %v809_v4 = vmul.f32 %v3198_v39, %v3726_v24  ;;  %v793_v60 = vmul.f32 %v3198_v39, %v3730_v26  ;;  %v3733_v1 = vld [vmem:[#allocation56_spill] sm:$0xff]  ;;  %v1641_v24 = vstv %s3306_s18 }
 0x1e3   : > { %v1613_v7 = vmax.f32 %v1549_v19, 0.0  ;;  %2122 = vmatpush3.bf16.msra.mxu1 %v2121_v31  ;;  %v1533_v34 = vadd.f32 %v1381_v9, %v1213_v8  ;;  %v3728_v31 = vld [vmem:[#allocation14_spill] sm:$0xff]  ;;  %v3729_v9 = vld [vmem:[#allocation69_spill] sm:$0xff] }
 0x1e4   : > { %v1257_v23 = vpop.permute.xlu0 %1256  ;;  %v841_v40 = vmul.f32 %v3198_v39, %v3729_v9  ;;  %v1650_v9 = vstv %s3318_s16  ;;  %s3508_s16 = scalar_lea.hbm %s3567_s6, %s2008_s8 }
 0x1e5   : > { %v2123_v50 = vpack.c.bf16 %v1614_v36, %v1613_v7  ;;  %v1502_v58 = vadd.f32 %v1257_v23, %v1182_v14  ;;  %v1597_v44 = vmax.f32 %v1533_v34, 0.0  ;;  %v1120_v14 = vmul.f32 %v3192_v28, %v3029_v18  ;;  %v3731_v18 = vld [vmem:[#allocation27_spill] sm:$0xff] }
 0x1e6   : > { %2265 = vset.pattern.permute.xlu1 %v3678_v45  ;;  %v1136_v45 = vmul.f32 %v3192_v28, %v3078_v21  ;;  %v840_v21 = vmul.f32 %v3198_v39, %v3727_v61  ;;  %v1119_v7 = vmul.f32 %v3192_v28, %v3026_v2  ;;  %v1232_v8 = vadd.f32 %v1168_v46, %v841_v40 }
 0x1e7   : > { %v1566_v57 = vmax.f32 %v1502_v58, 0.0  ;;  %1296 = vperm.xlu1 %2265, %v3723_v52   ;;  %v3276_v43 = vpop.permute.xlu1 %1070  ;;  %2124 = vmatprep.subr.bf16.mxu1 %v2123_v50  ;;  %v792_v58 = vmul.f32 %v3198_v39, %v3731_v18  ;;  %v1152_v2 = vmul.f32 %v3192_v28, %v3128_v37  ;;  %v1665_v61 = vlaneseq }
 0x1e8   : > { %v1385_v48 = vpop.permute.xlu0 %1384  ;;  %v1200_v62 = vadd.f32 %v1136_v45, %v809_v4  ;;  %v1231_v17 = vadd.f32 %v1167_v54, %v840_v21  ;;  %v824_v45 = vmul.f32 %v3198_v39, %v3733_v1  ;;  %v2005_v4 = vld [vmem:[%s396_s17 + $0x1] ss:$4 sm:$0xf]  ;;  %v1170_v1 = vmul.f32 %v3192_v28, %v3172_v42 }
 0x1e9   : > { %v2093_v47 = vpack.c.bf16 %v1566_v57, %v1565_v10  ;;  %v1534_v59 = vadd.f32 %v1385_v48, %v1214_v41  ;;  %v1184_v57 = vadd.f32 %v1120_v14, %v793_v60  ;;  %v1151_v48 = vmul.f32 %v3192_v28, %v3125_v55 }
 0x1ea   : > { %v1183_v37 = vadd.f32 %v1119_v7, %v792_v58  ;;  %v1666_v40 = vshrl.u32 %v1665_v61, 7  ;;  %v3739_v61 = vld [vmem:[#allocation29_spill] sm:$0xff] }
 0x1eb   : > { %v1598_v0 = vmax.f32 %v1534_v59, 0.0  ;;  %1424 = vperm.xlu1 %2265, %v3725_v38   ;;  %2094 = vmatpush3.bf16.msra.mxu0 %v2093_v47  ;;  %v1215_v54 = vadd.f32 %v1151_v48, %v824_v45 }
 0x1ec   : > { %v1325_v22 = vpop.permute.xlu1 %1324  ;;  %v1453_v35 = vpop.permute.xlu0 %1452  ;;  %v1671_v60 = vsub.s32 1, %v1666_v40 }
 0x1ed   : > { %v2125_v56 = vpack.c.bf16 %v1598_v0, %v1597_v44  ;;  %v1519_v19 = vadd.f32 %v1325_v22, %v1199_v30  ;;  %v1551_v51 = vadd.f32 %v1453_v35, %v1231_v17  ;;  %v1640_v35 = vld [vmem:[%s396_s17] ss:$4 sm:$0xf]  ;;  %v1645_v30 = vstv %s3308_s19 }
 0x1ef   : > { %1368 = vperm.xlu1 %2265, %v3728_v31   ;;  %2126 = vmatpush3.bf16.msra.mxu1 %v2125_v56  ;;  %v1583_v12 = vmax.f32 %v1519_v19, 0.0  ;;  %v1615_v33 = vmax.f32 %v1551_v51, 0.0  ;;  %v1642_v56 = vmul.f32 %v1641_v24, %v1640_v35  ;;  %v1646_v31 = vmul.f32 %v2005_v4, %v1645_v30  ;;  %v3738_v24 = vld [vmem:[#allocation28_spill] sm:$0xff] }
 0x1f0   : > { %v1329_v16 = vpop.permute.xlu1 %1328  ;;  %v1265_v23 = vpop.permute.xlu0 %1264  ;;  %v1679_v51 = vsub.s32 3, %v1666_v40 }
 0x1f1   : > { %v1520_v36 = vadd.f32 %v1329_v16, %v1200_v62  ;;  %v1504_v47 = vadd.f32 %v1265_v23, %v1184_v57  ;;  %v2006_v62 = vld [vmem:[%s396_s17 + $0x2] ss:$4 sm:$0xf]  ;;  %s1658_s17 = smul.f32 %s1657_s10, %s3308_s19 }
 0x1f2   : > { %v1651_v26 = vmul.f32 %v2006_v62, %v1650_v9 }
 0x1f3   : > { %v1584_v50 = vmax.f32 %v1520_v36, 0.0  ;;  %1496 = vperm.xlu1 %2265, %v2810_v63   ;;  %v3732_v63 = vld [vmem:[#allocation55_spill] sm:$0xff]  ;;  %v1568_v21 = vmax.f32 %v1504_v47, 0.0  ;;  %v1647_v36 = vadd.f32 %v1646_v31, %v1642_v56  ;;  %v3736_v47 = vld [vmem:[#allocation42_spill] sm:$0xff]  ;;  %s1659_s0 = sadd.f32 %s1658_s17, %s1655_s9 }
 0x1f4   : > { %v1457_v10 = vpop.permute.xlu1 %1456  ;;  %v825_v41 = vmul.f32 %v3198_v39, %v3732_v63  ;;  %v1393_v44 = vpop.permute.xlu0 %1392 }
 0x1f5   : > { %v2095_v34 = vpack.c.bf16 %v1584_v50, %v1583_v12  ;;  %v1552_v52 = vadd.f32 %v1457_v10, %v1232_v8  ;;  %v1667_v12 = vsub.s32 0, %v1666_v40  ;;  %v1652_v50 = vadd.f32 %v1651_v26, %v1647_v36  ;;  %s1663_s4 = sadd.f32 %s1662_s1, %s1659_s0  ;;  %s1829_s0 = scalar_lea.sflag [#allocation3], %s365_s2 }
 0x1f6   : > { %v1216_v38 = vadd.f32 %v1152_v2, %v825_v41  ;;  %v1675_v8 = vsub.s32 2, %v1666_v40  ;;  %v1138_v41 = vmul.f32 %v3192_v28, %v3084_v53  ;;  %s2297_s1 = scalar_lea.vmem %s3510_s15, 16 }
 0x1f7   : > { %v1616_v59 = vmax.f32 %v1552_v52, 0.0  ;;  %1304 = vperm.xlu1 %2265, %v2266_v32   ;;  %2096 = vmatprep.subr.bf16.mxu0 %v2095_v34  ;;  %v1672_v58 = vrot.slane %v1652_v50, %v1671_v60  ;;  %v3333_v10 = vrot.slane %v1652_v50, %v1667_v12  ;;  %v1680_v2 = vrot.slane %v1652_v50, %v1679_v51  ;;  %v3735_v52 = vld [vmem:[#allocation43_spill] sm:$0xff]  ;;  %p2298_p10 = scmp.ne.s32.totalorder %s3510_s15, %s2297_s1 }
 0x1f8   : > { %v1261_v0 = vpop.permute.xlu1 %1260  ;;  %v1536_v46 = vadd.f32 %v1393_v44, %v1216_v38  ;;  %v1137_v34 = vmul.f32 %v3192_v28, %v3082_v5  ;;  %v3337_v57 = vrot.slane %v1652_v50, %v1675_v8  ;;  %v810_v63 = vmul.f32 %v3198_v39, %v3735_v52  ;;  %v1461_v48 = vpop.permute.xlu0 %1460 }
 0x1f9   : > { %v2127_v55 = vpack.c.bf16 %v1616_v59, %v1615_v33  ;;  %v1503_v22 = vadd.f32 %v1261_v0, %v1183_v37  ;;  %1749 = vmatprep.mubr.f32.mxu0 %v1672_v58  ;;  %1819 = vmatprep.mubr.f32.mxu1 %v1680_v2  ;;  %v811_v59 = vmul.f32 %v3198_v39, %v3736_v47  ;;  %v3742_v47 = vld [vmem:[#allocation45_spill] sm:$0xff]  ;;  %p2299_p0 = pnand %p2298_p10, %p3797_p12 }
 0x1fa   : > { %v1600_v7 = vmax.f32 %v1536_v46, 0.0  ;;  %v1169_v32 = vmul.f32 %v3192_v28, %v3276_v43  ;;  %v1201_v5 = vadd.f32 %v1137_v34, %v810_v63  ;;  %v842_v37 = vmul.f32 %v3198_v39, %v2984_v29 }
 0x1fb   : > { %v1567_v19 = vmax.f32 %v1503_v22, 0.0  ;;  %1432 = vperm.xlu1 %2265, %v3721_v27   ;;  %2128 = vmatprep.subr.bf16.mxu1 %v2127_v55  ;;  %v1202_v44 = vadd.f32 %v1138_v41, %v811_v59  ;;  %v3737_v55 = vld [vmem:[#allocation71_spill] sm:$0xff]  ;;  %v1122_v38 = vmul.f32 %v3192_v28, %v3035_v49  ;;  %v795_v43 = vmul.f32 %v3198_v39, %v3738_v24  ;;  %p2300_p2 = pneg %p2299_p0 }
 0x1fc   : > { %v1389_v16 = vpop.permute.xlu1 %1388  ;;  %v843_v53 = vmul.f32 %v3198_v39, %v3737_v55  ;;  %v1233_v22 = vadd.f32 %v1169_v32, %v842_v37  ;;  %v1121_v29 = vmul.f32 %v3192_v28, %v3032_v20  ;;  %v1273_v4 = vpop.permute.xlu0 %1272  ;;  %v1154_v49 = vmul.f32 %v3192_v28, %v3134_v11 }
 0x1fd   : > { %v2097_v14 = vpack.c.bf16 %v1568_v21, %v1567_v19  ;;  %v1535_v17 = vadd.f32 %v1389_v16, %v1215_v54  ;;  %v794_v21 = vmul.f32 %v3198_v39, %v3739_v61  ;;  %v1186_v19 = vadd.f32 %v1122_v38, %v795_v43  ;;  %v3740_v16 = vld [vmem:[#allocation57_spill] sm:$0xff] }
 0x1fe   : > { %v1553_v54 = vadd.f32 %v1461_v48, %v1233_v22  ;;  %v1234_v30 = vadd.f32 %v1170_v1, %v843_v53  ;;  %v827_v9 = vmul.f32 %v3198_v39, %v3740_v16  ;;  %v1153_v20 = vmul.f32 %v3192_v28, %v3132_v3 }
 0x1ff   : > { %v1599_v23 = vmax.f32 %v1535_v17, 0.0  ;;  %2098 = vmatpush3.bf16.msra.mxu0 %v2097_v14  ;;  %v1185_v40 = vadd.f32 %v1121_v29, %v794_v21  ;;  %v1506_v17 = vadd.f32 %v1273_v4, %v1186_v19  ;;  %v812_v59 = vmul.f32 %v3198_v39, %v3742_v47  ;;  %v3746_v4 = vld [vmem:[#allocation30_spill] sm:$0xff] }
 0x200   : > { %v1617_v14 = vmax.f32 %v1553_v54, 0.0  ;;  %v1401_v26 = vpop.permute.xlu0 %1400  ;;  %v1218_v11 = vadd.f32 %v1154_v49, %v827_v9  ;;  %v1140_v32 = vmul.f32 %v3192_v28, %v3091_v15  ;;  %v3744_v15 = vld [vmem:[#allocation72_spill] sm:$0xff]  ;;  %v797_v54 = vmul.f32 %v3198_v39, %v3746_v4 }
 0x201   : > { %v2129_v18 = vpack.c.bf16 %v1600_v7, %v1599_v23  ;;  %v3331_v27 = vpop.permute.xlu1 %1078  ;;  %v3741_v7 = vld [vmem:[#allocation58_spill] sm:$0xff]  ;;  %v1570_v50 = vmax.f32 %v1506_v17, 0.0  ;;  %v845_v24 = vmul.f32 %v3198_v39, %v3744_v15 }
 0x202   : > { %v826_v23 = vmul.f32 %v3198_v39, %v3741_v7  ;;  %v1538_v8 = vadd.f32 %v1401_v26, %v1218_v11  ;;  %v3757_v15 = vld [vmem:[#allocation74_spill] sm:$0xff] }
 0x203   : > { %2130 = vmatpush3.bf16.msra.mxu1 %v2129_v18 }
 0x204   : > { %v1217_v58 = vadd.f32 %v1153_v20, %v826_v23  ;;  %v1602_v52 = vmax.f32 %v1538_v8, 0.0  ;;  %v1469_v37 = vpop.permute.xlu0 %1468  ;;  %v3750_v20 = vld [vmem:[#allocation59_spill] sm:$0xff] }
 0x206   : > { %v1333_v33 = vpop.permute.xlu1 %1332 }
 0x207   : > { %v1521_v45 = vadd.f32 %v1333_v33, %v1201_v5  ;;  %v1139_v33 = vmul.f32 %v3192_v28, %v3089_v6  ;;  %v1171_v5 = vmul.f32 %v3192_v28, %v3331_v27  ;;  %v1172_v6 = vmul.f32 %v3192_v28, %v3176_v25  ;;  %v3745_v27 = vld [vmem:[#allocation80_spill] sm:$0xff] }
 0x208   : > { %v1124_v43 = vmul.f32 %v3192_v28, %v3745_v27 }
 0x209   : > { %v1585_v42 = vmax.f32 %v1521_v45, 0.0  ;;  %v3743_v45 = vld [vmem:[#allocation44_spill] sm:$0xff]  ;;  %v1203_v55 = vadd.f32 %v1139_v33, %v812_v59  ;;  %v1236_v21 = vadd.f32 %v1172_v6, %v845_v24  ;;  %v846_v24 = vmul.f32 %v3198_v39, %v3757_v15 }
 0x20a   : > { %v1337_v0 = vpop.permute.xlu1 %1336  ;;  %v1188_v16 = vadd.f32 %v1124_v43, %v797_v54  ;;  %v3758_v43 = vld [vmem:[#allocation95_spill] sm:$0xff] }
 0x20b   : > { %v1522_v35 = vadd.f32 %v1337_v0, %v1202_v44  ;;  %v813_v44 = vmul.f32 %v3198_v39, %v3743_v45  ;;  %v844_v0 = vmul.f32 %v3198_v39, %v2990_v13  ;;  %v3754_v45 = vld [vmem:[#allocation47_spill] sm:$0xff] }
 0x20d   : > { %v1586_v56 = vmax.f32 %v1522_v35, 0.0  ;;  %v1235_v53 = vadd.f32 %v1171_v5, %v844_v0  ;;  %v1204_v22 = vadd.f32 %v1140_v32, %v813_v44  ;;  %v814_v44 = vmul.f32 %v3198_v39, %v3754_v45  ;;  %v3755_v0 = vld [vmem:[#allocation86_spill] sm:$0xff] }
 0x20e   : > { %v1465_v46 = vpop.permute.xlu1 %1464 }
 0x20f   : > { %v2099_v31 = vpack.c.bf16 %v1586_v56, %v1585_v42  ;;  %v1554_v62 = vadd.f32 %v1465_v46, %v1234_v30  ;;  %v3747_v42 = vld [vmem:[#allocation79_spill] sm:$0xff]  ;;  %v1281_v56 = vpop.permute.xlu0 %1280  ;;  %v1555_v30 = vadd.f32 %v1469_v37, %v1235_v53  ;;  %v3753_v37 = vld [vmem:[#allocation18_spill] sm:$0xff] }
 0x210   : > { %v1123_v13 = vmul.f32 %v3192_v28, %v3747_v42  ;;  %v3748_v46 = vld [vmem:[#allocation31_spill] sm:$0xff]  ;;  %v1508_v7 = vadd.f32 %v1281_v56, %v1188_v16  ;;  %v3759_v56 = vld [vmem:[#allocation73_spill] sm:$0xff] }
 0x211   : > { %v1618_v36 = vmax.f32 %v1554_v62, 0.0  ;;  %2100 = vmatprep.subr.bf16.mxu0 %v2099_v31  ;;  %v796_v49 = vmul.f32 %v3198_v39, %v3748_v46  ;;  %v3749_v31 = vld [vmem:[#allocation20_spill] sm:$0xff] }
 0x212   : > { %v1269_v60 = vpop.permute.xlu1 %1268  ;;  %v1156_v62 = vmul.f32 %v3192_v28, %v3749_v31 }
 0x213   : > { %v2131_v12 = vpack.c.bf16 %v1618_v36, %v1617_v14  ;;  %v1505_v51 = vadd.f32 %v1269_v60, %v1185_v40  ;;  %v829_v14 = vmul.f32 %v3198_v39, %v3750_v20  ;;  %v1187_v17 = vadd.f32 %v1123_v13, %v796_v49  ;;  %v3751_v36 = vld [vmem:[#allocation19_spill] sm:$0xff]  ;;  %v1409_v11 = vpop.permute.xlu0 %1408  ;;  %v3762_v49 = vld [vmem:[#allocation81_spill] sm:$0xff] }
 0x214   : > { %v1155_v26 = vmul.f32 %v3192_v28, %v3751_v36  ;;  %v1619_v60 = vmax.f32 %v1555_v30, 0.0  ;;  %v847_v30 = vmul.f32 %v3198_v39, %v3759_v56  ;;  %v3763_v20 = vld [vmem:[#allocation33_spill] sm:$0xff]  ;;  %v3764_v36 = vld [vmem:[#allocation92_spill] sm:$0xff] }
 0x215   : > { %v1569_v18 = vmax.f32 %v1505_v51, 0.0  ;;  %2132 = vmatprep.subr.bf16.mxu1 %v2131_v12  ;;  %v3752_v51 = vld [vmem:[#allocation60_spill] sm:$0xff]  ;;  %v1220_v8 = vadd.f32 %v1156_v62, %v829_v14  ;;  %v798_v14 = vmul.f32 %v3198_v39, %v3763_v20 }
 0x216   : > { %v1397_v2 = vpop.permute.xlu1 %1396  ;;  %v3772_v56 = vld [vmem:[#allocation76_spill] sm:$0xff] }
 0x217   : > { %v2101_v34 = vpack.c.bf16 %v1570_v50, %v1569_v18  ;;  %v1537_v3 = vadd.f32 %v1397_v2, %v1217_v58  ;;  %v828_v50 = vmul.f32 %v3198_v39, %v3752_v51  ;;  %v1572_v2 = vmax.f32 %v1508_v7, 0.0  ;;  %v1477_v53 = vpop.permute.xlu0 %1476 }
 0x219   : > { %v1601_v63 = vmax.f32 %v1537_v3, 0.0  ;;  %2102 = vmatpush3.bf16.msra.mxu0 %v2101_v34  ;;  %v1540_v34 = vadd.f32 %v1409_v11, %v1220_v8  ;;  %v3765_v11 = vld [vmem:[#allocation61_spill] sm:$0xff] }
 0x21b   : > { %v2133_v41 = vpack.c.bf16 %v1602_v52, %v1601_v63  ;;  %v1087_v48 = vpop.permute.xlu1 %1086  ;;  %v1219_v52 = vadd.f32 %v1155_v26, %v828_v50  ;;  %v1604_v47 = vmax.f32 %v1540_v34, 0.0  ;;  %v1289_v31 = vpop.permute.xlu0 %1288  ;;  %v1158_v26 = vmul.f32 %v3192_v28, %v3764_v36  ;;  %v3766_v50 = vld [vmem:[#allocation91_spill] sm:$0xff] }
 0x21c   : > { %v1173_v6 = vmul.f32 %v3192_v28, %v1087_v48  ;;  %v3760_v48 = vld [vmem:[#allocation82_spill] sm:$0xff]  ;;  %v1157_v8 = vmul.f32 %v3192_v28, %v3766_v50 }
 0x21d   : > { %2134 = vmatpush3.bf16.msra.mxu1 %v2133_v41 }
 0x21e   : > { %v1237_v4 = vadd.f32 %v1173_v6, %v846_v24  ;;  %v3769_v24 = vld [vmem:[#allocation49_spill] sm:$0xff] }
 0x21f   : > { %v1417_v34 = vpop.permute.xlu0 %1416 }
 0x220   : > { %v1341_v1 = vpop.permute.xlu1 %1340  ;;  %v1557_v62 = vadd.f32 %v1477_v53, %v1237_v4 }
 0x221   : > { %v1523_v38 = vadd.f32 %v1341_v1, %v1203_v55  ;;  %v1141_v1 = vmul.f32 %v3192_v28, %v3753_v37  ;;  %v1142_v55 = vmul.f32 %v3192_v28, %v3755_v0 }
 0x223   : > { %v1587_v25 = vmax.f32 %v1523_v38, 0.0  ;;  %v1205_v27 = vadd.f32 %v1141_v1, %v814_v44  ;;  %v1485_v15 = vpop.permute.xlu0 %1484 }
 0x224   : > { %v1345_v35 = vpop.permute.xlu1 %1344 }
 0x225   : > { %v1524_v29 = vadd.f32 %v1345_v35, %v1204_v22  ;;  %v3756_v22 = vld [vmem:[#allocation46_spill] sm:$0xff] }
 0x226   : > { %v815_v35 = vmul.f32 %v3198_v39, %v3756_v22  ;;  %v3768_v22 = vld [vmem:[#allocation87_spill] sm:$0xff] }
 0x227   : > { %v1588_v61 = vmax.f32 %v1524_v29, 0.0  ;;  %v1174_v29 = vmul.f32 %v3192_v28, %v3758_v43  ;;  %v3770_v43 = vld [vmem:[#allocation88_spill] sm:$0xff] }
 0x228   : > { %v1473_v19 = vpop.permute.xlu1 %1472  ;;  %v1206_v42 = vadd.f32 %v1142_v55, %v815_v35  ;;  %v1143_v35 = vmul.f32 %v3192_v28, %v3768_v22 }
 0x229   : > { %v2103_v9 = vpack.c.bf16 %v1588_v61, %v1587_v25  ;;  %v1556_v40 = vadd.f32 %v1473_v19, %v1236_v21  ;;  %v1126_v25 = vmul.f32 %v3192_v28, %v3760_v48  ;;  %v3761_v21 = vld [vmem:[#allocation32_spill] sm:$0xff]  ;;  %v1125_v19 = vmul.f32 %v3192_v28, %v3762_v49 }
 0x22a   : > { %v799_v46 = vmul.f32 %v3198_v39, %v3761_v21 }
 0x22b   : > { %v1620_v23 = vmax.f32 %v1556_v40, 0.0  ;;  %2104 = vmatprep.subr.bf16.mxu0 %v2103_v9  ;;  %v1238_v40 = vadd.f32 %v1174_v29, %v847_v30  ;;  %v1189_v51 = vadd.f32 %v1125_v19, %v798_v14  ;;  %v1144_v29 = vmul.f32 %v3192_v28, %v3770_v43  ;;  %v1293_v19 = vpop.permute.xlu0 %1292 }
 0x22c   : > { %v1277_v12 = vpop.permute.xlu1 %1276  ;;  %v848_v30 = vmul.f32 %v3198_v39, %v3772_v56  ;;  %v3786_v56 = vld [vmem:[#allocation50_spill] sm:$0xff] }
 0x22d   : > { %v2135_v18 = vpack.c.bf16 %v1620_v23, %v1619_v60  ;;  %v1507_v58 = vadd.f32 %v1277_v12, %v1187_v17  ;;  %v1190_v60 = vadd.f32 %v1126_v25, %v799_v46  ;;  %v831_v12 = vmul.f32 %v3198_v39, %v3765_v11  ;;  %v3773_v25 = vld [vmem:[#allocation96_spill] sm:$0xff] }
 0x22f   : > { %v1571_v3 = vmax.f32 %v1507_v58, 0.0  ;;  %2136 = vmatprep.subr.bf16.mxu1 %v2135_v18  ;;  %v1510_v18 = vadd.f32 %v1289_v31, %v1190_v60  ;;  %v1621_v58 = vmax.f32 %v1557_v62, 0.0  ;;  %v3774_v62 = vld [vmem:[#allocation75_spill] sm:$0xff]  ;;  %v1421_v60 = vpop.permute.xlu0 %1420 }
 0x230   : > { %v1405_v63 = vpop.permute.xlu1 %1404 }
 0x231   : > { %v2105_v41 = vpack.c.bf16 %v1572_v2, %v1571_v3  ;;  %v1539_v33 = vadd.f32 %v1405_v63, %v1219_v52  ;;  %v3767_v52 = vld [vmem:[#allocation62_spill] sm:$0xff] }
 0x232   : > { %v830_v63 = vmul.f32 %v3198_v39, %v3767_v52  ;;  %v3779_v52 = vld [vmem:[#allocation93_spill] sm:$0xff] }
 0x233   : > { %v1603_v59 = vmax.f32 %v1539_v33, 0.0  ;;  %2106 = vmatpush3.bf16.msra.mxu0 %v2105_v41  ;;  %v1222_v41 = vadd.f32 %v1158_v26, %v831_v12 }
 0x234   : > { %v1221_v1 = vadd.f32 %v1157_v8, %v830_v63  ;;  %v3777_v8 = vld [vmem:[#allocation83_spill] sm:$0xff]  ;;  %v1159_v63 = vmul.f32 %v3192_v28, %v3779_v52 }
 0x235   : > { %v2137_v32 = vpack.c.bf16 %v1604_v47, %v1603_v59  ;;  %v3401_v5 = vpop.permute.xlu1 %1094  ;;  %v1574_v59 = vmax.f32 %v1510_v18, 0.0  ;;  %v1128_v18 = vmul.f32 %v3192_v28, %v3777_v8 }
 0x236   : > { %v1175_v4 = vmul.f32 %v3192_v28, %v3401_v5 }
 0x237   : > { %2138 = vmatpush3.bf16.msra.mxu1 %v2137_v32  ;;  %v1542_v32 = vadd.f32 %v1417_v34, %v1222_v41  ;;  %v3778_v34 = vld [vmem:[#allocation34_spill] sm:$0xff] }
 0x238   : > { %v1239_v21 = vadd.f32 %v1175_v4, %v848_v30  ;;  %v819_v30 = vmul.f32 %v3198_v39, %v3786_v56 }
 0x239   : > { %v1606_v55 = vmax.f32 %v1542_v32, 0.0  ;;  %v3781_v32 = vld [vmem:[#allocation64_spill] sm:$0xff] }
 0x23a   : > { %v1349_v38 = vpop.permute.xlu1 %1348 }
 0x23b   : > { %v1525_v54 = vadd.f32 %v1349_v38, %v1205_v27  ;;  %v816_v27 = vmul.f32 %v3198_v39, %v3769_v24 }
 0x23d   : > { %v1589_v16 = vmax.f32 %v1525_v54, 0.0  ;;  %v1207_v48 = vadd.f32 %v1143_v35, %v816_v27  ;;  %v3785_v27 = vld [vmem:[#allocation90_spill] sm:$0xff] }
 0x23e   : > { %v1353_v13 = vpop.permute.xlu1 %1352  ;;  %v1146_v43 = vmul.f32 %v3192_v28, %v3785_v27 }
 0x23f   : > { %v1526_v61 = vadd.f32 %v1353_v13, %v1206_v42  ;;  %v3771_v42 = vld [vmem:[#allocation48_spill] sm:$0xff] }
 0x240   : > { %v817_v13 = vmul.f32 %v3198_v39, %v3771_v42 }
 0x241   : > { %v1590_v9 = vmax.f32 %v1526_v61, 0.0  ;;  %v1176_v61 = vmul.f32 %v3192_v28, %v3773_v25 }
 0x242   : > { %v1481_v17 = vpop.permute.xlu1 %1480  ;;  %v1208_v49 = vadd.f32 %v1144_v29, %v817_v13 }
 0x243   : > { %v2107_v7 = vpack.c.bf16 %v1590_v9, %v1589_v16  ;;  %v1558_v23 = vadd.f32 %v1481_v17, %v1238_v40  ;;  %v849_v16 = vmul.f32 %v3198_v39, %v3774_v62  ;;  %v1559_v9 = vadd.f32 %v1485_v15, %v1239_v21  ;;  %v3784_v15 = vld [vmem:[#allocation51_spill] sm:$0xff] }
 0x244   : > { %v818_v24 = vmul.f32 %v3198_v39, %v3784_v15 }
 0x245   : > { %v1622_v2 = vmax.f32 %v1558_v23, 0.0  ;;  %2108 = vmatprep.subr.bf16.mxu0 %v2107_v7  ;;  %v1240_v14 = vadd.f32 %v1176_v61, %v849_v16  ;;  %v3775_v7 = vld [vmem:[#allocation17_spill] sm:$0xff]  ;;  %v1623_v11 = vmax.f32 %v1559_v9, 0.0  ;;  %v3787_v61 = vld [vmem:[#allocation78_spill] sm:$0xff]  ;;  %v1210_v16 = vadd.f32 %v1146_v43, %v819_v30 }
 0x246   : > { %v1285_v3 = vpop.permute.xlu1 %1284  ;;  %v1127_v23 = vmul.f32 %v3192_v28, %v3775_v7  ;;  %v850_v21 = vmul.f32 %v3198_v39, %v3787_v61 }
 0x247   : > { %v2139_v33 = vpack.c.bf16 %v1622_v2, %v1621_v58  ;;  %v1509_v47 = vadd.f32 %v1285_v3, %v1189_v51  ;;  %v3776_v51 = vld [vmem:[#allocation35_spill] sm:$0xff]  ;;  %v801_v3 = vmul.f32 %v3198_v39, %v3778_v34 }
 0x248   : > { %v800_v50 = vmul.f32 %v3198_v39, %v3776_v51 }
 0x249   : > { %v1573_v37 = vmax.f32 %v1509_v47, 0.0  ;;  %2140 = vmatprep.subr.bf16.mxu1 %v2139_v33  ;;  %v3780_v33 = vld [vmem:[#allocation94_spill] sm:$0xff] }
 0x24a   : > { %v1413_v45 = vpop.permute.xlu1 %1412  ;;  %v1191_v41 = vadd.f32 %v1127_v23, %v800_v50  ;;  %v1160_v47 = vmul.f32 %v3192_v28, %v3780_v33  ;;  %v3791_v23 = vld [vmem:[#allocation37_spill] sm:$0xff] }
 0x24b   : > { %v2109_v44 = vpack.c.bf16 %v1574_v59, %v1573_v37  ;;  %v1541_v0 = vadd.f32 %v1413_v45, %v1221_v1  ;;  %v1365_v59 = vpop.permute.xlu0 %1364  ;;  %v832_v37 = vmul.f32 %v3198_v39, %v3781_v32  ;;  %v1192_v45 = vadd.f32 %v1128_v18, %v801_v3  ;;  %v3793_v3 = vld [vmem:[#allocation36_spill] sm:$0xff] }
 0x24c   : > { %v1511_v1 = vadd.f32 %v1293_v19, %v1191_v41  ;;  %v803_v52 = vmul.f32 %v3198_v39, %v3793_v3  ;;  %v3794_v41 = vld [vmem:[#allocation21_spill] sm:$0xff] }
 0x24d   : > { %v1605_v6 = vmax.f32 %v1541_v0, 0.0  ;;  %2110 = vmatpush3.bf16.msra.mxu0 %v2109_v44  ;;  %v3782_v44 = vld [vmem:[#allocation63_spill] sm:$0xff]  ;;  %v1223_v22 = vadd.f32 %v1159_v63, %v832_v37  ;;  %v1161_v33 = vmul.f32 %v3192_v28, %v3794_v41  ;;  %v3795_v37 = vld [vmem:[#allocation66_spill] sm:$0xff] }
 0x24e   : > { %v833_v0 = vmul.f32 %v3198_v39, %v3782_v44  ;;  %v1575_v4 = vmax.f32 %v1511_v1, 0.0  ;;  %v834_v1 = vmul.f32 %v3198_v39, %v3795_v37 }
 0x24f   : > { %v2141_v53 = vpack.c.bf16 %v1606_v55, %v1605_v6  ;;  %v1103_v38 = vpop.permute.xlu1 %1102  ;;  %v3783_v6 = vld [vmem:[#allocation89_spill] sm:$0xff] }
 0x250   : > { %v1224_v29 = vadd.f32 %v1160_v47, %v833_v0  ;;  %v1177_v42 = vmul.f32 %v3192_v28, %v1103_v38 }
 0x251   : > { %2142 = vmatpush3.bf16.msra.mxu1 %v2141_v53  ;;  %v1145_v53 = vmul.f32 %v3192_v28, %v3783_v6 }
 0x254   : > { %v1357_v54 = vpop.permute.xlu1 %1356 }
 0x255   : > { %v1527_v46 = vadd.f32 %v1357_v54, %v1207_v48  ;;  %v1543_v54 = vadd.f32 %v1421_v60, %v1223_v22  ;;  %v1493_v48 = vpop.permute.xlu0 %1492 }
 0x257   : > { %v1591_v40 = vmax.f32 %v1527_v46, 0.0  ;;  %v1209_v46 = vadd.f32 %v1145_v53, %v818_v24  ;;  %v1225_v24 = vadd.f32 %v1161_v33, %v834_v1 }
 0x258   : > { %v1361_v31 = vpop.permute.xlu1 %1360 }
 0x259   : > { %v1528_v5 = vadd.f32 %v1361_v31, %v1208_v49  ;;  %v3788_v31 = vld [vmem:[#allocation97_spill] sm:$0xff]  ;;  %v1529_v9 = vadd.f32 %v1365_v59, %v1209_v46  ;;  %v1301_v50 = vpop.permute.xlu0 %1300  ;;  %v1825_v46 = vstv %s1663_s4  ;;  %s2301_s4 = sshll.u32 %s2406_s3, 4  ;;  %s2302_s4 = int_to_ptr.vmem [resolvable:$false] %s2301_s4 }
 0x25a   : > { %v1178_v62 = vmul.f32 %v3192_v28, %v3788_v31  ;;  %s2303_s5 = scalar_lea.vmem %s2302_s4, 32  ;;  %p2304_p7 = scmp.lt.s32.totalorder %s3510_s15, %s2302_s4 }
 0x25b   : > { %v1592_v20 = vmax.f32 %v1528_v5, 0.0  ;;  %v1607_v5 = vmax.f32 %v1543_v54, 0.0  ;;  %v1593_v8 = vmax.f32 %v1529_v9, 0.0  ;;  %p2305_p9 = scmp.lt.s32.totalorder %s2303_s5, %s2297_s1 }
 0x25c   : > { %v1489_v17 = vpop.permute.xlu1 %1488 }
 0x25d   : > { %v2111_v36 = vpack.c.bf16 %v1592_v20, %v1591_v40  ;;  %v1560_v26 = vadd.f32 %v1489_v17, %v1240_v14  ;;  %v1241_v40 = vadd.f32 %v1177_v42, %v850_v21  ;;  %v3789_v14 = vld [vmem:[#allocation77_spill] sm:$0xff]  ;;  %v1429_v53 = vpop.permute.xlu0 %1428  ;;  %p2306_p11 = por %p2305_p9, %p2304_p7 }
 0x25e   : > { %v851_v17 = vmul.f32 %v3198_v39, %v3789_v14 }
 0x25f   : > { %v1624_v12 = vmax.f32 %v1560_v26, 0.0  ;;  %2112 = vmatprep.subr.bf16.mxu0 %v2111_v36  ;;  %v3790_v36 = vld [vmem:[#allocation84_spill] sm:$0xff]  ;;  %v1561_v18 = vadd.f32 %v1493_v48, %v1241_v40  ;;  %p2307_p13 = pnand %p2306_p11, %p2300_p2 }
 0x260   : > { %v1129_v26 = vmul.f32 %v3192_v28, %v3790_v36  ;;  %v1242_v34 = vadd.f32 %v1178_v62, %v851_v17 }
 0x261   : > { %v2143_v58 = vpack.c.bf16 %v1624_v12, %v1623_v11  ;;  %v1043_v2 = vpop.permute.xlu1 %1042  ;;  %v802_v11 = vmul.f32 %v3198_v39, %v3791_v23  ;;  %v3792_v12 = vld [vmem:[#allocation85_spill] sm:$0xff] }
 0x262   : > { %v1130_v51 = vmul.f32 %v3192_v28, %v3792_v12  ;;  %v1162_v0 = vmul.f32 %v3192_v28, %v1043_v2 }
 0x263   : > { %2144 = vmatprep.subr.bf16.mxu1 %v2143_v58  ;;  %v1193_v47 = vadd.f32 %v1129_v26, %v802_v11 }
 0x265   : > { %v1513_v44 = vadd.f32 %v1301_v50, %v1193_v47 }
 0x266   : > { %v1297_v55 = vpop.permute.xlu1 %1296 }
 0x267   : > { %v1512_v35 = vadd.f32 %v1297_v55, %v1192_v45  ;;  %v1194_v45 = vadd.f32 %v1130_v51, %v803_v52  ;;  %v1625_v55 = vmax.f32 %v1561_v18, 0.0 }
 0x269   : > { %v1576_v13 = vmax.f32 %v1512_v35, 0.0  ;;  %v3796_v35 = vld [vmem:[#allocation65_spill] sm:$0xff] }
 0x26a   : > { %v1425_v25 = vpop.permute.xlu1 %1424  ;;  %v835_v15 = vmul.f32 %v3198_v39, %v3796_v35 }
 0x26b   : > { %v2113_v49 = vpack.c.bf16 %v1576_v13, %v1575_v4  ;;  %v1544_v19 = vadd.f32 %v1425_v25, %v1224_v29  ;;  %v1577_v29 = vmax.f32 %v1513_v44, 0.0  ;;  %v1545_v4 = vadd.f32 %v1429_v53, %v1225_v24 }
 0x26c   : > { %v1226_v42 = vadd.f32 %v1162_v0, %v835_v15 }
 0x26d   : > { %v1608_v38 = vmax.f32 %v1544_v19, 0.0  ;;  %2114 = vmatpush3.bf16.msra.mxu0 %v2113_v49  ;;  %v1609_v56 = vmax.f32 %v1545_v4, 0.0 }
 0x26e   : > { %v1369_v20 = vpop.permute.xlu1 %1368 }
 0x26f   : > { %v2145_v60 = vpack.c.bf16 %v1608_v38, %v1607_v5  ;;  %v1530_v7 = vadd.f32 %v1369_v20, %v1210_v16 }
 0x271   : > { %v1594_v58 = vmax.f32 %v1530_v7, 0.0  ;;  %2146 = vmatpush3.bf16.msra.mxu1 %v2145_v60 }
 0x272   : > { %v1497_v63 = vpop.permute.xlu1 %1496 }
 0x273   : > { %v2115_v59 = vpack.c.bf16 %v1594_v58, %v1593_v8  ;;  %v1562_v32 = vadd.f32 %v1497_v63, %v1242_v34 }
 0x275   : > { %v1626_v6 = vmax.f32 %v1562_v32, 0.0  ;;  %2116 = vmatprep.subr.bf16.mxu0 %v2115_v59 }
 0x276   : > { %v1305_v22 = vpop.permute.xlu1 %1304 }
 0x277   : > { %v2147_v27 = vpack.c.bf16 %v1626_v6, %v1625_v55  ;;  %v1514_v43 = vadd.f32 %v1305_v22, %v1194_v45 }
 0x279   : > { %v1578_v54 = vmax.f32 %v1514_v43, 0.0  ;;  %2148 = vmatprep.subr.bf16.mxu1 %v2147_v27 }
 0x27a   : > { %v1433_v13 = vpop.permute.xlu1 %1432 }
 0x27b   : > { %v2117_v28 = vpack.c.bf16 %v1578_v54, %v1577_v29  ;;  %v1546_v2 = vadd.f32 %v1433_v13, %v1226_v42 }
 0x27d   : > { %v1610_v30 = vmax.f32 %v1546_v2, 0.0  ;;  %2118 = vmatpush3.bf16.msra.mxu0 %v2117_v28 }
 0x27f   : > { %v2149_v48 = vpack.c.bf16 %v1610_v30, %v1609_v56 }
 0x280   : > { %1750 = vmatmul.mubr.f32.vlgmr.msra.gmra.mrb[0].mxu0 %v3333_v10 }
 0x281   : > { %2150 = vmatpush3.bf16.msra.mxu1 %v2149_v48 }
 0x284   : > { %1820 = vmatmul.mubr.f32.vlgmr.msra.gmra.mrb[0].mxu1 %v3337_v57 }
 0x353   : > { %v2049_v39 = vpop.f32.mrb[0].mxu0 }
 0x354   : > { %v2050_v25 = vpop.f32.mrb[1].mxu0 }
 0x355   : > { %v2051_v10 = vadd.f32 %v2050_v25, %v2049_v39 }
 0x357   : > { %v2084_v61 = vpop.f32.mrb[0].mxu1 }
 0x358   : > { %v2085_v57 = vpop.f32.mrb[1].mxu1 }
 0x359   : > { %v2086_v21 = vadd.f32 %v2085_v57, %v2084_v61 }
 0x35b   : > { %v1822_v49 = vadd.f32 %v2086_v21, %v2051_v10 }
 0x35d   : > { %v1826_v19 = vadd.f32 %v1825_v46, %v1822_v49 }
 0x35f   : > { %1827 = vst [vmem:[%s366_s29] sm:$0x1] %v1826_v19 }
 0x360   : > { %2310 = shalt.err (!%p2307_p13)
}
 0x361   : > { %s2311_s2 = scalar_lea.hbm %s3508_s16, 16  ;;  %s2315_s8 = scalar_lea.hbm %s3567_s6, 64 }
 0x362   : > { %p2312_p1 = scmp.ne.s32.totalorder %s3508_s16, %s2311_s2  ;;  %p2316_p6 = scmp.lt.u32.totalorder %s3508_s16, %s3567_s6 }
 0x363   : > { %p2317_p3 = scmp.lt.u32.totalorder %s2315_s8, %s2311_s2  ;;  %p2319_p10 = scmp.lt.u32.totalorder %s2311_s2, %s3508_s16 }
 0x364   : > { %p2313_p4 = pnand %p2312_p1, %p3797_p12 }
 0x365   : > { %p2318_p8 = por %p2317_p3, %p2316_p6 }
 0x366   : > { %p2314_p5 = pneg %p2313_p4 }
 0x367   : > { %p2320_p0 = por %p2319_p10, %p2318_p8 }
 0x369   : > { %p2321_p2 = pnand %p2320_p0, %p2314_p5 }
 0x36b   : > { %2324 = shalt.err (!%p2321_p2)
}
 0x36c   : > { %2159 = dma.vmem_to_hbm [thread:$0]  (%p3797_p12), %s3510_s15, 16, %s3508_s16, %s1829_s0  }
 0x36d PF: > { %p2176_p7 = scmp.ge.s32.totalorder %s2399_s28, 2  ;;  %s1856_s13 = sand.u32 1, %s2371_s21  }
 0x36e   : > { %p3798_p9 = scmp.ne.s32.totalorder %s3601_s12, 0  ;;  %s1857_s14 = scalar_lea.sflag [#allocation3], %s1856_s13 }
 0x370   : > { %p2169_p11 = pnand %p2176_p7, %p3798_p9 }
 0x372   : > { %2366 = dma.done.wait (!%p2169_p11), %s1857_s14, 16  }
 0x373   : > { %2368 = vsyncadd (!%p2169_p11), %s1857_s14, 4294967280  ;;  %s21_s28 = sadd.s32 1, %s2399_s28   ;;  %s3799_s11 = sld [smem:[#allocation11_spill]] }
 0x374   : > { %p18_p13 = scmp.ge.s32.totalorder %s21_s28, 6   ;;  %s3800_s21 = smov %s2375_s22 }
 0x375   : > { %s3801_s22 = smov %s2379_s23  ;;  %s3802_s23 = smov %s2524_s20 }
 0x376   : > { %s3803_s24 = smov %s2391_s26  ;;  %s3804_s25 = smov %s2395_s27 }
 0x377   : > { %s3805_s26 = smov %s3808_s7  ;;  %20 = sbr.rel (!%p18_p13) target bundleno = 14 (0xe), region = 99 }
 0x379   : > { %s3806_s27 = smov %s3799_s11 }
 0x37e   :  { %1861 = vsyncpa [#allocation3], 1 }
 0x37f   :  { %1863 = vsyncpa [#allocation3 + $0x1], 1 }
 0x380   :  { %1864 = vsyncpa [#allocation4], 1 }
 0x381   :  { %1866 = vsyncpa [#allocation4 + $0x1], 1 }
 0x382   :  { %1867 = vsyncpa [#allocation6], 1 }

</bundles_post_ra>
